<compile_context>
chip_gen: v6e
topology: v6e:2x2x1
jax: 0.10.0
libtpu: 0.0.40
codegen_flags: <defaults>
</compile_context>

<pallas_src>
import functools

import jax
import jax.numpy as jnp
import numpy as np
from jax import lax
from jax.experimental import pallas as pl
from jax.experimental.pallas import tpu as pltpu

BN_EPS = 1e-5


@functools.lru_cache(maxsize=None)
def _spatial_masks(H, W):
    """f32 validity masks (7, N) for the 7x7 / pad-3 conv shift decomposition."""
    N = H * W
    j = np.arange(N) % W
    i = np.arange(N) // W
    col = np.stack([((j + k - 3 >= 0) & (j + k - 3 < W)) for k in range(7)])
    row = np.stack([((i + k - 3 >= 0) & (i + k - 3 < H)) for k in range(7)])
    return col.astype(np.float32), row.astype(np.float32)


@functools.lru_cache(maxsize=None)
def _resize_idx(H, W, Hf, Wf):
    """Nearest-neighbor (F.interpolate default) source indices."""
    return (np.arange(H) * Hf) // H, (np.arange(W) * Wf) // W


def _feafuse_kernel(has_xf, W, *refs):
    """Fused per-batch body.  All feature tiles are channel-major (C, N)."""
    if has_xf:
        (xc_ref, xt_ref, wp_ref, bp_ref, wfc1_ref, wfc2_ref,
         w0_ref, w1_ref, cmask_ref, rmask_ref,
         xf_ref, wcc_ref, wct_ref, bcc_ref, bct_ref, out_ref) = refs
    else:
        (xc_ref, xt_ref, wp_ref, bp_ref, wfc1_ref, wfc2_ref,
         w0_ref, w1_ref, cmask_ref, rmask_ref, out_ref) = refs

    f32 = jnp.float32

    def mm(a, b):  # (M, K) @ (K, N), f32 accumulation on the MXU.
        return lax.dot_general(a, b, (((1,), (0,)), ((), ())),
                               preferred_element_type=f32)

    xc = xc_ref[...].astype(f32)                                    # (C, N)
    C, N = xc.shape

    # --- proj 1x1 conv (inference BN folded into Wp'/bp') + ReLU -------------
    xt = jnp.maximum(mm(wp_ref[...], xt_ref[...]) + bp_ref[...], 0.0)  # (C, N)

    # Concatenated feature x = [x_c ; x_t] (2C channels), kept as two halves.

    # --- channel attention: batched shared MLP over [avg | max] pools --------
    pools = jnp.concatenate(
        [jnp.concatenate([jnp.mean(xc, axis=1, keepdims=True),
                          jnp.max(xc, axis=1, keepdims=True)], axis=1),
         jnp.concatenate([jnp.mean(xt, axis=1, keepdims=True),
                          jnp.max(xt, axis=1, keepdims=True)], axis=1)],
        axis=0)                                        # (2C, 2): cols = avg,max
    h = jnp.maximum(mm(wfc1_ref[...], pools), 0.0)     # (hidden, 2)
    o = mm(wfc2_ref[...], h)                           # (2C, 2)
    cattn = jax.nn.sigmoid(o[:, 0:1] + o[:, 1:2])      # (2C, 1)
    cattn_c, cattn_t = cattn[:C], cattn[C:]

    # --- spatial attention: channel mean/max maps -> 7x7 pad-3 conv ----------
    # Exact shift decomposition on the flat (., N) lane layout (n = i*W + j):
    #   stage A: 7 lane-rolls (column offsets) + column masks, combined per
    #            kernel row with broadcast FMAs into acc (7, N);
    #   stage B: 7 lane-rolls by multiples of W (row offsets) + row masks.
    ch_mean = (jnp.sum(xc, axis=0, keepdims=True) +
               jnp.sum(xt, axis=0, keepdims=True)) * (1.0 / (2.0 * C))  # (1, N)
    ch_max = jnp.maximum(jnp.max(xc, axis=0, keepdims=True),
                         jnp.max(xt, axis=0, keepdims=True))            # (1, N)
    maps = jnp.concatenate([ch_mean, ch_max], axis=0)                   # (2, N)

    w0, w1 = w0_ref[...], w1_ref[...]                  # (7, 7) each
    cmask, rmask = cmask_ref[...], rmask_ref[...]      # (7, N) each
    acc = jnp.zeros((7, N), f32)
    for kj in range(7):
        if kj == 3:
            sh = maps                                  # zero shift, mask == 1
        else:
            sh = pltpu.roll(maps, shift=(3 - kj) % N, axis=1) * cmask[kj:kj + 1]
        acc = acc + w0[:, kj:kj + 1] * sh[0:1] + w1[:, kj:kj + 1] * sh[1:2]
    sa = acc[3:4]                                      # ki == 3: zero row shift
    for ki in range(7):
        if ki == 3:
            continue
        sa = sa + (pltpu.roll(acc[ki:ki + 1], shift=((3 - ki) * W) % N, axis=1)
                   * rmask[ki:ki + 1])
    sattn = jax.nn.sigmoid(sa)                         # (1, N)

    # --- out = c_attn * x + s_attn * x ----------------------------------------
    out_c = xc * (cattn_c + sattn)                     # (C, N)
    out_t = xt * (cattn_t + sattn)

    # --- fused-feature branch: 1x1 conv (C -> 2C) on resized x_f, added in ---
    if has_xf:
        xf = xf_ref[...]                               # (C, N) bf16
        out_c = out_c + mm(wcc_ref[...], xf) + bcc_ref[...]
        out_t = out_t + mm(wct_ref[...], xf) + bct_ref[...]

    # Output tile is (2, C, N); wrapper reshape to (2C, H, W) is free.
    out_ref[0] = out_c
    out_ref[1] = out_t


def feafuse_block(x_c, x_t, x_f, H, W, params):
    """Pallas FeaFuseBlock.forward: x_c NCHW, x_t (B,N,C), x_f NCHW/None -> NCHW."""
    B, N, C = x_t.shape
    assert N == H * W and x_c.shape == (B, C, H, W)
    f32, bf16 = jnp.float32, jnp.bfloat16
    p = params
    has_xf = x_f is not None

    # Per-batch feature tiles, channel-major (B, C, N), N on the lane axis.
    xc_cm = x_c.reshape(B, C, N)                          # free reshape
    # One wrapper transpose gives a canonical, lane-dense bf16 MXU RHS.
    xt_cm = jnp.transpose(x_t, (0, 2, 1)).astype(bf16)    # (B, C, N)

    # Fold inference BatchNorm into the projection weights / bias.
    scale = p['bn_gamma'] * lax.rsqrt(p['bn_var'] + BN_EPS)
    wp_f = (scale[:, None] * p['Wp']).astype(bf16)                        # (C, C)
    bp_f = (scale * (p['bp'] - p['bn_mean']) + p['bn_beta']
            ).astype(f32).reshape(C, 1)

    cmask_np, rmask_np = _spatial_masks(H, W)             # trace-time constants
    cmask, rmask = jnp.asarray(cmask_np), jnp.asarray(rmask_np)           # (7, N)
    w0 = jnp.asarray(p['w_sa'][0], f32)                                   # (7, 7)
    w1 = jnp.asarray(p['w_sa'][1], f32)
    wfc1 = jnp.asarray(p['Wfc1'], f32)                                    # (hid, 2C)
    wfc2 = jnp.asarray(p['Wfc2'], f32)                                    # (2C, hid)

    batch_ops = [xc_cm, xt_cm]
    const_ops = [wp_f, bp_f, wfc1, wfc2, w0, w1, cmask, rmask]

    if has_xf:
        Hf, Wf = x_f.shape[2], x_f.shape[3]
        idx_h, idx_w = _resize_idx(H, W, Hf, Wf)
        # Nearest-neighbor resize as a single fused advanced-index gather.
        xf_cm = x_f[:, :, idx_h[:, None], idx_w[None, :]].reshape(B, C, N
                                                                  ).astype(bf16)
        wcc = jnp.asarray(p['Wconv'][:C], bf16)                           # (C, C)
        wct = jnp.asarray(p['Wconv'][C:], bf16)
        bcc = jnp.asarray(p['bconv'][:C], f32).reshape(C, 1)
        bct = jnp.asarray(p['bconv'][C:], f32).reshape(C, 1)
        xf_batch, xf_consts = [xf_cm], [wcc, wct, bcc, bct]
    else:
        xf_batch, xf_consts = [], []

    operands = batch_ops + const_ops + xf_batch + xf_consts

    def batch_spec(shape):
        nd = len(shape)
        return pl.BlockSpec((None,) + shape, lambda b, _nd=nd: (b,) + (0,) * _nd)

    def const_spec(arr):
        nd = arr.ndim
        return pl.BlockSpec(arr.shape, lambda b, _nd=nd: (0,) * _nd)

    in_specs = ([batch_spec(a.shape[1:]) for a in batch_ops]
                + [const_spec(a) for a in const_ops]
                + [batch_spec(a.shape[1:]) for a in xf_batch]
                + [const_spec(a) for a in xf_consts])

    # Explicit scoped-VMEM budget sized from the real (double-buffered) blocks.
    nbytes = lambda a: int(np.prod(a.shape)) * a.dtype.itemsize
    out_block = 2 * C * N * 4
    per_step = sum(nbytes(a) // B for a in batch_ops + xf_batch) + out_block
    const_bytes = sum(nbytes(a) for a in const_ops + xf_consts)
    vmem_limit = int(min(64 << 20,
                         max(32 << 20, 2 * (per_step + const_bytes) + (8 << 20))))

    out = pl.pallas_call(
        functools.partial(_feafuse_kernel, has_xf, W),
        grid=(B,),
        in_specs=in_specs,
        out_specs=pl.BlockSpec((None, 2, C, N), lambda b: (b, 0, 0, 0)),
        out_shape=jax.ShapeDtypeStruct((B, 2, C, N), f32),
        compiler_params=pltpu.CompilerParams(
            dimension_semantics=("parallel",),
            vmem_limit_bytes=vmem_limit),
    )(*operands)

    # (B, 2, C, N) -> (B, 2C, H, W): contiguous, metadata-only reshape.
    return out.reshape(B, 2 * C, H, W)


def init_params(key, C):
    ks = jax.random.split(key, 10)
    s = 0.25
    hidden = (2 * C) // 4
    return {
        # 1x1-conv weights stored conv-style as (out_channels, in_channels).
        'Wp': jax.random.normal(ks[0], (C, C), jnp.float32) * s,
        'bp': jax.random.normal(ks[1], (C,), jnp.float32) * s,
        'bn_gamma': 1.0 + 0.1 * jax.random.normal(ks[2], (C,), jnp.float32),
        'bn_beta': 0.1 * jax.random.normal(ks[3], (C,), jnp.float32),
        'bn_mean': 0.1 * jax.random.normal(ks[4], (C,), jnp.float32),
        'bn_var': 1.0 + 0.1 * jax.random.uniform(ks[5], (C,), jnp.float32),
        'Wfc1': jax.random.normal(ks[6], (hidden, 2 * C), jnp.float32) * s,
        'Wfc2': jax.random.normal(ks[7], (2 * C, hidden), jnp.float32) * s,
        'w_sa': jax.random.normal(ks[8], (2, 7, 7), jnp.float32) * 0.15,  # (in=2,kh,kw)
        'Wconv': jax.random.normal(ks[9], (2 * C, C), jnp.float32) * s,
        'bconv': 0.1 * jnp.arange(2 * C, dtype=jnp.float32),
    }


def reference(x_c, x_t, x_f, H, W, p):
    """Pure-JAX mirror of the PyTorch forward (NCHW), exact f32, for checking."""
    hp = lax.Precision.HIGHEST
    B, N, C = x_t.shape
    xt = jnp.transpose(x_t, (0, 2, 1)).reshape(B, C, H, W)
    y = (jnp.einsum('oi,bihw->bohw', p['Wp'], xt, precision=hp)
         + p['bp'][None, :, None, None])
    y = ((y - p['bn_mean'][None, :, None, None])
         / jnp.sqrt(p['bn_var'] + BN_EPS)[None, :, None, None]
         * p['bn_gamma'][None, :, None, None] + p['bn_beta'][None, :, None, None])
    xt = jnp.maximum(y, 0.0)
    x = jnp.concatenate([x_c, xt], axis=1)                  # (B, 2C, H, W)

    avg = x.mean(axis=(2, 3))
    mx = x.max(axis=(2, 3))

    def mlp(v):
        h = jnp.maximum(jnp.einsum('hi,bi->bh', p['Wfc1'], v, precision=hp), 0.0)
        return jnp.einsum('oh,bh->bo', p['Wfc2'], h, precision=hp)

    cattn = jax.nn.sigmoid(mlp(avg) + mlp(mx))[:, :, None, None]

    sm = x.mean(axis=1, keepdims=True)
    sx = x.max(axis=1, keepdims=True)
    s_in = jnp.concatenate([sm, sx], axis=1)                # (B, 2, H, W)
    s_conv = lax.conv_general_dilated(
        s_in, p['w_sa'][None], (1, 1), [(3, 3), (3, 3)],
        dimension_numbers=('NCHW', 'OIHW', 'NCHW'), precision=hp)
    sattn = jax.nn.sigmoid(s_conv)

    out = cattn * x + sattn * x
    if x_f is not None:
        Hf, Wf = x_f.shape[2], x_f.shape[3]
        idx_h = (jnp.arange(H) * Hf) // H
        idx_w = (jnp.arange(W) * Wf) // W
        xf_r = x_f[:, :, idx_h, :][:, :, :, idx_w]
        out = out + (jnp.einsum('oi,bihw->bohw', p['Wconv'], xf_r, precision=hp)
                     + p['bconv'][None, :, None, None])
    return out


if __name__ == "__main__":
    key = jax.random.PRNGKey(0)
    B, C, H, W = 2, 4, 16, 16
    N = H * W
    k1, k2, k3, k4 = jax.random.split(key, 4)
    x_c = jax.random.normal(k1, (B, C, H, W), jnp.float32)
    x_t = jax.random.normal(k2, (B, N, C), jnp.float32)
    x_f = jax.random.normal(k3, (B, C, H // 2, W // 2), jnp.float32)
    params = init_params(k4, C)

    fused = jax.jit(feafuse_block, static_argnames=("H", "W"))

    out = jax.block_until_ready(fused(x_c, x_t, x_f, H=H, W=W, params=params))
    assert out.shape == (B, 2 * C, H, W)
    ref = reference(x_c, x_t, x_f, H, W, params)
    np.testing.assert_allclose(np.asarray(out), np.asarray(ref),
                               rtol=3e-2, atol=3e-2)

    # x_f = None path (separate pallas_call variant without the fused-feature
    # operands: no dummy zeros array, no wasted DMA).
    out2 = jax.block_until_ready(fused(x_c, x_t, None, H=H, W=W, params=params))
    ref2 = reference(x_c, x_t, None, H, W, params)
    np.testing.assert_allclose(np.asarray(out2), np.asarray(ref2),
                               rtol=3e-2, atol=3e-2)

    print("KERNEL_OK")
</pallas_src>

<mosaic_0001>
module attributes {stable_mosaic.version = 11 : i64} {
  func.func @_feafuse_kernel(%arg0: i32, %arg1: memref<1x4x256xf32, #tpu.memory_space<vmem>>, %arg2: memref<1x4x256xbf16, #tpu.memory_space<vmem>>, %arg3: memref<4x4xbf16, #tpu.memory_space<vmem>>, %arg4: memref<4x1xf32, #tpu.memory_space<vmem>>, %arg5: memref<2x8xf32, #tpu.memory_space<vmem>>, %arg6: memref<8x2xf32, #tpu.memory_space<vmem>>, %arg7: memref<7x7xf32, #tpu.memory_space<vmem>>, %arg8: memref<7x7xf32, #tpu.memory_space<vmem>>, %arg9: memref<7x256xf32, #tpu.memory_space<vmem>>, %arg10: memref<7x256xf32, #tpu.memory_space<vmem>>, %arg11: memref<1x4x256xbf16, #tpu.memory_space<vmem>>, %arg12: memref<4x4xbf16, #tpu.memory_space<vmem>>, %arg13: memref<4x4xbf16, #tpu.memory_space<vmem>>, %arg14: memref<4x1xf32, #tpu.memory_space<vmem>>, %arg15: memref<4x1xf32, #tpu.memory_space<vmem>>, %arg16: memref<1x2x4x256xf32, #tpu.memory_space<vmem>>) attributes {dimension_semantics = [#tpu.dimension_semantics<parallel>], iteration_bounds = array<i64: 2>, scalar_prefetch = 0 : i64, scratch_operands = 0 : i64, tpu.core_type = #tpu.core_type<tc>, window_params = [{transform_indices = @transform_0, window_bounds = array<i64: 1, 4, 256>}, {transform_indices = @transform_1, window_bounds = array<i64: 1, 4, 256>}, {pipeline_mode = #tpu.pipeline_mode<synchronous>, transform_indices = @transform_2, window_bounds = array<i64: 4, 4>}, {pipeline_mode = #tpu.pipeline_mode<synchronous>, transform_indices = @transform_3, window_bounds = array<i64: 4, 1>}, {pipeline_mode = #tpu.pipeline_mode<synchronous>, transform_indices = @transform_4, window_bounds = array<i64: 2, 8>}, {pipeline_mode = #tpu.pipeline_mode<synchronous>, transform_indices = @transform_5, window_bounds = array<i64: 8, 2>}, {pipeline_mode = #tpu.pipeline_mode<synchronous>, transform_indices = @transform_6, window_bounds = array<i64: 7, 7>}, {pipeline_mode = #tpu.pipeline_mode<synchronous>, transform_indices = @transform_7, window_bounds = array<i64: 7, 7>}, {pipeline_mode = #tpu.pipeline_mode<synchronous>, transform_indices = @transform_8, window_bounds = array<i64: 7, 256>}, {pipeline_mode = #tpu.pipeline_mode<synchronous>, transform_indices = @transform_9, window_bounds = array<i64: 7, 256>}, {transform_indices = @transform_10, window_bounds = array<i64: 1, 4, 256>}, {pipeline_mode = #tpu.pipeline_mode<synchronous>, transform_indices = @transform_11, window_bounds = array<i64: 4, 4>}, {pipeline_mode = #tpu.pipeline_mode<synchronous>, transform_indices = @transform_12, window_bounds = array<i64: 4, 4>}, {pipeline_mode = #tpu.pipeline_mode<synchronous>, transform_indices = @transform_13, window_bounds = array<i64: 4, 1>}, {pipeline_mode = #tpu.pipeline_mode<synchronous>, transform_indices = @transform_14, window_bounds = array<i64: 4, 1>}, {transform_indices = @transform_15, window_bounds = array<i64: 1, 2, 4, 256>}]} {
    %c0 = arith.constant 0 : index
    %c0_0 = arith.constant 0 : index
    %c0_1 = arith.constant 0 : index
    %0 = vector.load %arg1[%c0, %c0_0, %c0_1] : memref<1x4x256xf32, #tpu.memory_space<vmem>>, vector<1x4x256xf32>
    %1 = vector.shape_cast %0 : vector<1x4x256xf32> to vector<4x256xf32>
    %c0_2 = arith.constant 0 : index
    %c0_3 = arith.constant 0 : index
    %2 = vector.load %arg3[%c0_2, %c0_3] : memref<4x4xbf16, #tpu.memory_space<vmem>>, vector<4x4xbf16>
    %c0_4 = arith.constant 0 : index
    %c0_5 = arith.constant 0 : index
    %c0_6 = arith.constant 0 : index
    %3 = vector.load %arg2[%c0_4, %c0_5, %c0_6] : memref<1x4x256xbf16, #tpu.memory_space<vmem>>, vector<1x4x256xbf16>
    %4 = vector.shape_cast %3 : vector<1x4x256xbf16> to vector<4x256xbf16>
    %cst = arith.constant dense<0.000000e+00> : vector<4x256xf32>
    %5 = tpu.matmul %2, %4, %cst {dimension_numbers = #tpu.dot_dimension_numbers<[1], [0], [0], [1], [0, 0, 1, 1], [], []>} : vector<4x4xbf16>, vector<4x256xbf16>, vector<4x256xf32> -> vector<4x256xf32>
    %c0_7 = arith.constant 0 : index
    %c0_8 = arith.constant 0 : index
    %6 = vector.load %arg4[%c0_7, %c0_8] : memref<4x1xf32, #tpu.memory_space<vmem>>, vector<4x1xf32>
    %7 = vector.broadcast %6 : vector<4x1xf32> to vector<4x256xf32>
    %8 = arith.addf %5, %7 : vector<4x256xf32>
    %cst_9 = arith.constant 0.000000e+00 : f32
    %9 = vector.broadcast %cst_9 : f32 to vector<4x256xf32>
    %10 = arith.maximumf %8, %9 : vector<4x256xf32>
    %cst_10 = arith.constant dense<0.000000e+00> : vector<4xf32>
    %11 = vector.multi_reduction <add>, %1, %cst_10 [1] : vector<4x256xf32> to vector<4xf32>
    %12 = vector.shape_cast %11 : vector<4xf32> to vector<4x1xf32>
    %cst_11 = arith.constant 2.560000e+02 : f32
    %13 = vector.broadcast %cst_11 : f32 to vector<4x1xf32>
    %14 = arith.divf %12, %13 : vector<4x1xf32>
    %cst_12 = arith.constant dense<0xFF800000> : vector<4xf32>
    %15 = vector.multi_reduction <maximumf>, %1, %cst_12 [1] : vector<4x256xf32> to vector<4xf32>
    %16 = vector.shape_cast %15 : vector<4xf32> to vector<4x1xf32>
    %17 = tpu.concatenate %14, %16 in 1 : vector<4x1xf32>, vector<4x1xf32> -> vector<4x2xf32>
    %cst_13 = arith.constant dense<0.000000e+00> : vector<4xf32>
    %18 = vector.multi_reduction <add>, %10, %cst_13 [1] : vector<4x256xf32> to vector<4xf32>
    %19 = vector.shape_cast %18 : vector<4xf32> to vector<4x1xf32>
    %cst_14 = arith.constant 2.560000e+02 : f32
    %20 = vector.broadcast %cst_14 : f32 to vector<4x1xf32>
    %21 = arith.divf %19, %20 : vector<4x1xf32>
    %cst_15 = arith.constant dense<0xFF800000> : vector<4xf32>
    %22 = vector.multi_reduction <maximumf>, %10, %cst_15 [1] : vector<4x256xf32> to vector<4xf32>
    %23 = vector.shape_cast %22 : vector<4xf32> to vector<4x1xf32>
    %24 = tpu.concatenate %21, %23 in 1 : vector<4x1xf32>, vector<4x1xf32> -> vector<4x2xf32>
    %25 = tpu.concatenate %17, %24 in 0 : vector<4x2xf32>, vector<4x2xf32> -> vector<8x2xf32>
    %c0_16 = arith.constant 0 : index
    %c0_17 = arith.constant 0 : index
    %26 = vector.load %arg5[%c0_16, %c0_17] : memref<2x8xf32, #tpu.memory_space<vmem>>, vector<2x8xf32>
    %cst_18 = arith.constant dense<0.000000e+00> : vector<2x2xf32>
    %27 = tpu.matmul %26, %25, %cst_18 {dimension_numbers = #tpu.dot_dimension_numbers<[1], [0], [0], [1], [0, 0, 1, 1], [], []>} : vector<2x8xf32>, vector<8x2xf32>, vector<2x2xf32> -> vector<2x2xf32>
    %cst_19 = arith.constant 0.000000e+00 : f32
    %28 = vector.broadcast %cst_19 : f32 to vector<2x2xf32>
    %29 = arith.maximumf %27, %28 : vector<2x2xf32>
    %c0_20 = arith.constant 0 : index
    %c0_21 = arith.constant 0 : index
    %30 = vector.load %arg6[%c0_20, %c0_21] : memref<8x2xf32, #tpu.memory_space<vmem>>, vector<8x2xf32>
    %cst_22 = arith.constant dense<0.000000e+00> : vector<8x2xf32>
    %31 = tpu.matmul %30, %29, %cst_22 {dimension_numbers = #tpu.dot_dimension_numbers<[1], [0], [0], [1], [0, 0, 1, 1], [], []>} : vector<8x2xf32>, vector<2x2xf32>, vector<8x2xf32> -> vector<8x2xf32>
    %32 = vector.extract_strided_slice %31 {offsets = [0, 0], sizes = [8, 1], strides = [1, 1]} : vector<8x2xf32> to vector<8x1xf32>
    %33 = vector.extract_strided_slice %31 {offsets = [0, 1], sizes = [8, 1], strides = [1, 1]} : vector<8x2xf32> to vector<8x1xf32>
    %34 = arith.addf %32, %33 : vector<8x1xf32>
    %35 = arith.negf %34 : vector<8x1xf32>
    %36 = math.exp %35 : vector<8x1xf32>
    %cst_23 = arith.constant 1.000000e+00 : f32
    %37 = vector.broadcast %cst_23 : f32 to vector<8x1xf32>
    %38 = arith.addf %37, %36 : vector<8x1xf32>
    %39 = arith.divf %37, %38 : vector<8x1xf32>
    %40 = vector.extract_strided_slice %39 {offsets = [0, 0], sizes = [4, 1], strides = [1, 1]} : vector<8x1xf32> to vector<4x1xf32>
    %41 = vector.extract_strided_slice %39 {offsets = [4, 0], sizes = [4, 1], strides = [1, 1]} : vector<8x1xf32> to vector<4x1xf32>
    %cst_24 = arith.constant dense<0.000000e+00> : vector<256xf32>
    %42 = vector.multi_reduction <add>, %1, %cst_24 [0] : vector<4x256xf32> to vector<256xf32>
    %43 = vector.shape_cast %42 : vector<256xf32> to vector<1x256xf32>
    %cst_25 = arith.constant dense<0.000000e+00> : vector<256xf32>
    %44 = vector.multi_reduction <add>, %10, %cst_25 [0] : vector<4x256xf32> to vector<256xf32>
    %45 = vector.shape_cast %44 : vector<256xf32> to vector<1x256xf32>
    %46 = arith.addf %43, %45 : vector<1x256xf32>
    %cst_26 = arith.constant 1.250000e-01 : f32
    %47 = vector.broadcast %cst_26 : f32 to vector<1x256xf32>
    %48 = arith.mulf %46, %47 : vector<1x256xf32>
    %cst_27 = arith.constant dense<0xFF800000> : vector<256xf32>
    %49 = vector.multi_reduction <maximumf>, %1, %cst_27 [0] : vector<4x256xf32> to vector<256xf32>
    %50 = vector.shape_cast %49 : vector<256xf32> to vector<1x256xf32>
    %cst_28 = arith.constant dense<0xFF800000> : vector<256xf32>
    %51 = vector.multi_reduction <maximumf>, %10, %cst_28 [0] : vector<4x256xf32> to vector<256xf32>
    %52 = vector.shape_cast %51 : vector<256xf32> to vector<1x256xf32>
    %53 = arith.maximumf %50, %52 : vector<1x256xf32>
    %54 = tpu.concatenate %48, %53 in 0 : vector<1x256xf32>, vector<1x256xf32> -> vector<2x256xf32>
    %c0_29 = arith.constant 0 : index
    %c0_30 = arith.constant 0 : index
    %55 = vector.load %arg7[%c0_29, %c0_30] : memref<7x7xf32, #tpu.memory_space<vmem>>, vector<7x7xf32>
    %c0_31 = arith.constant 0 : index
    %c0_32 = arith.constant 0 : index
    %56 = vector.load %arg8[%c0_31, %c0_32] : memref<7x7xf32, #tpu.memory_space<vmem>>, vector<7x7xf32>
    %c0_33 = arith.constant 0 : index
    %c0_34 = arith.constant 0 : index
    %57 = vector.load %arg9[%c0_33, %c0_34] : memref<7x256xf32, #tpu.memory_space<vmem>>, vector<7x256xf32>
    %c0_35 = arith.constant 0 : index
    %c0_36 = arith.constant 0 : index
    %58 = vector.load %arg10[%c0_35, %c0_36] : memref<7x256xf32, #tpu.memory_space<vmem>>, vector<7x256xf32>
    %cst_37 = arith.constant 0.000000e+00 : f32
    %59 = vector.broadcast %cst_37 : f32 to vector<7x256xf32>
    %c3_i32 = arith.constant 3 : i32
    %60 = tpu.dynamic_rotate %54 by %c3_i32 dim 1 : vector<2x256xf32>, i32 -> vector<2x256xf32>
    %61 = vector.extract_strided_slice %57 {offsets = [0, 0], sizes = [1, 256], strides = [1, 1]} : vector<7x256xf32> to vector<1x256xf32>
    %62 = vector.broadcast %61 : vector<1x256xf32> to vector<2x256xf32>
    %63 = arith.mulf %60, %62 : vector<2x256xf32>
    %64 = vector.extract_strided_slice %55 {offsets = [0, 0], sizes = [7, 1], strides = [1, 1]} : vector<7x7xf32> to vector<7x1xf32>
    %65 = vector.extract_strided_slice %63 {offsets = [0, 0], sizes = [1, 256], strides = [1, 1]} : vector<2x256xf32> to vector<1x256xf32>
    %66 = vector.broadcast %64 : vector<7x1xf32> to vector<7x256xf32>
    %67 = vector.broadcast %65 : vector<1x256xf32> to vector<7x256xf32>
    %68 = arith.mulf %66, %67 : vector<7x256xf32>
    %69 = arith.addf %59, %68 : vector<7x256xf32>
    %70 = vector.extract_strided_slice %56 {offsets = [0, 0], sizes = [7, 1], strides = [1, 1]} : vector<7x7xf32> to vector<7x1xf32>
    %71 = vector.extract_strided_slice %63 {offsets = [1, 0], sizes = [1, 256], strides = [1, 1]} : vector<2x256xf32> to vector<1x256xf32>
    %72 = vector.broadcast %70 : vector<7x1xf32> to vector<7x256xf32>
    %73 = vector.broadcast %71 : vector<1x256xf32> to vector<7x256xf32>
    %74 = arith.mulf %72, %73 : vector<7x256xf32>
    %75 = arith.addf %69, %74 : vector<7x256xf32>
    %c2_i32 = arith.constant 2 : i32
    %76 = tpu.dynamic_rotate %54 by %c2_i32 dim 1 : vector<2x256xf32>, i32 -> vector<2x256xf32>
    %77 = vector.extract_strided_slice %57 {offsets = [1, 0], sizes = [1, 256], strides = [1, 1]} : vector<7x256xf32> to vector<1x256xf32>
    %78 = vector.broadcast %77 : vector<1x256xf32> to vector<2x256xf32>
    %79 = arith.mulf %76, %78 : vector<2x256xf32>
    %80 = vector.extract_strided_slice %55 {offsets = [0, 1], sizes = [7, 1], strides = [1, 1]} : vector<7x7xf32> to vector<7x1xf32>
    %81 = vector.extract_strided_slice %79 {offsets = [0, 0], sizes = [1, 256], strides = [1, 1]} : vector<2x256xf32> to vector<1x256xf32>
    %82 = vector.broadcast %80 : vector<7x1xf32> to vector<7x256xf32>
    %83 = vector.broadcast %81 : vector<1x256xf32> to vector<7x256xf32>
    %84 = arith.mulf %82, %83 : vector<7x256xf32>
    %85 = arith.addf %75, %84 : vector<7x256xf32>
    %86 = vector.extract_strided_slice %56 {offsets = [0, 1], sizes = [7, 1], strides = [1, 1]} : vector<7x7xf32> to vector<7x1xf32>
    %87 = vector.extract_strided_slice %79 {offsets = [1, 0], sizes = [1, 256], strides = [1, 1]} : vector<2x256xf32> to vector<1x256xf32>
    %88 = vector.broadcast %86 : vector<7x1xf32> to vector<7x256xf32>
    %89 = vector.broadcast %87 : vector<1x256xf32> to vector<7x256xf32>
    %90 = arith.mulf %88, %89 : vector<7x256xf32>
    %91 = arith.addf %85, %90 : vector<7x256xf32>
    %c1_i32 = arith.constant 1 : i32
    %92 = tpu.dynamic_rotate %54 by %c1_i32 dim 1 : vector<2x256xf32>, i32 -> vector<2x256xf32>
    %93 = vector.extract_strided_slice %57 {offsets = [2, 0], sizes = [1, 256], strides = [1, 1]} : vector<7x256xf32> to vector<1x256xf32>
    %94 = vector.broadcast %93 : vector<1x256xf32> to vector<2x256xf32>
    %95 = arith.mulf %92, %94 : vector<2x256xf32>
    %96 = vector.extract_strided_slice %55 {offsets = [0, 2], sizes = [7, 1], strides = [1, 1]} : vector<7x7xf32> to vector<7x1xf32>
    %97 = vector.extract_strided_slice %95 {offsets = [0, 0], sizes = [1, 256], strides = [1, 1]} : vector<2x256xf32> to vector<1x256xf32>
    %98 = vector.broadcast %96 : vector<7x1xf32> to vector<7x256xf32>
    %99 = vector.broadcast %97 : vector<1x256xf32> to vector<7x256xf32>
    %100 = arith.mulf %98, %99 : vector<7x256xf32>
    %101 = arith.addf %91, %100 : vector<7x256xf32>
    %102 = vector.extract_strided_slice %56 {offsets = [0, 2], sizes = [7, 1], strides = [1, 1]} : vector<7x7xf32> to vector<7x1xf32>
    %103 = vector.extract_strided_slice %95 {offsets = [1, 0], sizes = [1, 256], strides = [1, 1]} : vector<2x256xf32> to vector<1x256xf32>
    %104 = vector.broadcast %102 : vector<7x1xf32> to vector<7x256xf32>
    %105 = vector.broadcast %103 : vector<1x256xf32> to vector<7x256xf32>
    %106 = arith.mulf %104, %105 : vector<7x256xf32>
    %107 = arith.addf %101, %106 : vector<7x256xf32>
    %108 = vector.extract_strided_slice %55 {offsets = [0, 3], sizes = [7, 1], strides = [1, 1]} : vector<7x7xf32> to vector<7x1xf32>
    %109 = vector.extract_strided_slice %54 {offsets = [0, 0], sizes = [1, 256], strides = [1, 1]} : vector<2x256xf32> to vector<1x256xf32>
    %110 = vector.broadcast %108 : vector<7x1xf32> to vector<7x256xf32>
    %111 = vector.broadcast %109 : vector<1x256xf32> to vector<7x256xf32>
    %112 = arith.mulf %110, %111 : vector<7x256xf32>
    %113 = arith.addf %107, %112 : vector<7x256xf32>
    %114 = vector.extract_strided_slice %56 {offsets = [0, 3], sizes = [7, 1], strides = [1, 1]} : vector<7x7xf32> to vector<7x1xf32>
    %115 = vector.extract_strided_slice %54 {offsets = [1, 0], sizes = [1, 256], strides = [1, 1]} : vector<2x256xf32> to vector<1x256xf32>
    %116 = vector.broadcast %114 : vector<7x1xf32> to vector<7x256xf32>
    %117 = vector.broadcast %115 : vector<1x256xf32> to vector<7x256xf32>
    %118 = arith.mulf %116, %117 : vector<7x256xf32>
    %119 = arith.addf %113, %118 : vector<7x256xf32>
    %c255_i32 = arith.constant 255 : i32
    %120 = tpu.dynamic_rotate %54 by %c255_i32 dim 1 : vector<2x256xf32>, i32 -> vector<2x256xf32>
    %121 = vector.extract_strided_slice %57 {offsets = [4, 0], sizes = [1, 256], strides = [1, 1]} : vector<7x256xf32> to vector<1x256xf32>
    %122 = vector.broadcast %121 : vector<1x256xf32> to vector<2x256xf32>
    %123 = arith.mulf %120, %122 : vector<2x256xf32>
    %124 = vector.extract_strided_slice %55 {offsets = [0, 4], sizes = [7, 1], strides = [1, 1]} : vector<7x7xf32> to vector<7x1xf32>
    %125 = vector.extract_strided_slice %123 {offsets = [0, 0], sizes = [1, 256], strides = [1, 1]} : vector<2x256xf32> to vector<1x256xf32>
    %126 = vector.broadcast %124 : vector<7x1xf32> to vector<7x256xf32>
    %127 = vector.broadcast %125 : vector<1x256xf32> to vector<7x256xf32>
    %128 = arith.mulf %126, %127 : vector<7x256xf32>
    %129 = arith.addf %119, %128 : vector<7x256xf32>
    %130 = vector.extract_strided_slice %56 {offsets = [0, 4], sizes = [7, 1], strides = [1, 1]} : vector<7x7xf32> to vector<7x1xf32>
    %131 = vector.extract_strided_slice %123 {offsets = [1, 0], sizes = [1, 256], strides = [1, 1]} : vector<2x256xf32> to vector<1x256xf32>
    %132 = vector.broadcast %130 : vector<7x1xf32> to vector<7x256xf32>
    %133 = vector.broadcast %131 : vector<1x256xf32> to vector<7x256xf32>
    %134 = arith.mulf %132, %133 : vector<7x256xf32>
    %135 = arith.addf %129, %134 : vector<7x256xf32>
    %c254_i32 = arith.constant 254 : i32
    %136 = tpu.dynamic_rotate %54 by %c254_i32 dim 1 : vector<2x256xf32>, i32 -> vector<2x256xf32>
    %137 = vector.extract_strided_slice %57 {offsets = [5, 0], sizes = [1, 256], strides = [1, 1]} : vector<7x256xf32> to vector<1x256xf32>
    %138 = vector.broadcast %137 : vector<1x256xf32> to vector<2x256xf32>
    %139 = arith.mulf %136, %138 : vector<2x256xf32>
    %140 = vector.extract_strided_slice %55 {offsets = [0, 5], sizes = [7, 1], strides = [1, 1]} : vector<7x7xf32> to vector<7x1xf32>
    %141 = vector.extract_strided_slice %139 {offsets = [0, 0], sizes = [1, 256], strides = [1, 1]} : vector<2x256xf32> to vector<1x256xf32>
    %142 = vector.broadcast %140 : vector<7x1xf32> to vector<7x256xf32>
    %143 = vector.broadcast %141 : vector<1x256xf32> to vector<7x256xf32>
    %144 = arith.mulf %142, %143 : vector<7x256xf32>
    %145 = arith.addf %135, %144 : vector<7x256xf32>
    %146 = vector.extract_strided_slice %56 {offsets = [0, 5], sizes = [7, 1], strides = [1, 1]} : vector<7x7xf32> to vector<7x1xf32>
    %147 = vector.extract_strided_slice %139 {offsets = [1, 0], sizes = [1, 256], strides = [1, 1]} : vector<2x256xf32> to vector<1x256xf32>
    %148 = vector.broadcast %146 : vector<7x1xf32> to vector<7x256xf32>
    %149 = vector.broadcast %147 : vector<1x256xf32> to vector<7x256xf32>
    %150 = arith.mulf %148, %149 : vector<7x256xf32>
    %151 = arith.addf %145, %150 : vector<7x256xf32>
    %c253_i32 = arith.constant 253 : i32
    %152 = tpu.dynamic_rotate %54 by %c253_i32 dim 1 : vector<2x256xf32>, i32 -> vector<2x256xf32>
    %153 = vector.extract_strided_slice %57 {offsets = [6, 0], sizes = [1, 256], strides = [1, 1]} : vector<7x256xf32> to vector<1x256xf32>
    %154 = vector.broadcast %153 : vector<1x256xf32> to vector<2x256xf32>
    %155 = arith.mulf %152, %154 : vector<2x256xf32>
    %156 = vector.extract_strided_slice %55 {offsets = [0, 6], sizes = [7, 1], strides = [1, 1]} : vector<7x7xf32> to vector<7x1xf32>
    %157 = vector.extract_strided_slice %155 {offsets = [0, 0], sizes = [1, 256], strides = [1, 1]} : vector<2x256xf32> to vector<1x256xf32>
    %158 = vector.broadcast %156 : vector<7x1xf32> to vector<7x256xf32>
    %159 = vector.broadcast %157 : vector<1x256xf32> to vector<7x256xf32>
    %160 = arith.mulf %158, %159 : vector<7x256xf32>
    %161 = arith.addf %151, %160 : vector<7x256xf32>
    %162 = vector.extract_strided_slice %56 {offsets = [0, 6], sizes = [7, 1], strides = [1, 1]} : vector<7x7xf32> to vector<7x1xf32>
    %163 = vector.extract_strided_slice %155 {offsets = [1, 0], sizes = [1, 256], strides = [1, 1]} : vector<2x256xf32> to vector<1x256xf32>
    %164 = vector.broadcast %162 : vector<7x1xf32> to vector<7x256xf32>
    %165 = vector.broadcast %163 : vector<1x256xf32> to vector<7x256xf32>
    %166 = arith.mulf %164, %165 : vector<7x256xf32>
    %167 = arith.addf %161, %166 : vector<7x256xf32>
    %168 = vector.extract_strided_slice %167 {offsets = [3, 0], sizes = [1, 256], strides = [1, 1]} : vector<7x256xf32> to vector<1x256xf32>
    %169 = vector.extract_strided_slice %167 {offsets = [0, 0], sizes = [1, 256], strides = [1, 1]} : vector<7x256xf32> to vector<1x256xf32>
    %c48_i32 = arith.constant 48 : i32
    %170 = tpu.dynamic_rotate %169 by %c48_i32 dim 1 : vector<1x256xf32>, i32 -> vector<1x256xf32>
    %171 = vector.extract_strided_slice %58 {offsets = [0, 0], sizes = [1, 256], strides = [1, 1]} : vector<7x256xf32> to vector<1x256xf32>
    %172 = arith.mulf %170, %171 : vector<1x256xf32>
    %173 = arith.addf %168, %172 : vector<1x256xf32>
    %174 = vector.extract_strided_slice %167 {offsets = [1, 0], sizes = [1, 256], strides = [1, 1]} : vector<7x256xf32> to vector<1x256xf32>
    %c32_i32 = arith.constant 32 : i32
    %175 = tpu.dynamic_rotate %174 by %c32_i32 dim 1 : vector<1x256xf32>, i32 -> vector<1x256xf32>
    %176 = vector.extract_strided_slice %58 {offsets = [1, 0], sizes = [1, 256], strides = [1, 1]} : vector<7x256xf32> to vector<1x256xf32>
    %177 = arith.mulf %175, %176 : vector<1x256xf32>
    %178 = arith.addf %173, %177 : vector<1x256xf32>
    %179 = vector.extract_strided_slice %167 {offsets = [2, 0], sizes = [1, 256], strides = [1, 1]} : vector<7x256xf32> to vector<1x256xf32>
    %c16_i32 = arith.constant 16 : i32
    %180 = tpu.dynamic_rotate %179 by %c16_i32 dim 1 : vector<1x256xf32>, i32 -> vector<1x256xf32>
    %181 = vector.extract_strided_slice %58 {offsets = [2, 0], sizes = [1, 256], strides = [1, 1]} : vector<7x256xf32> to vector<1x256xf32>
    %182 = arith.mulf %180, %181 : vector<1x256xf32>
    %183 = arith.addf %178, %182 : vector<1x256xf32>
    %184 = vector.extract_strided_slice %167 {offsets = [4, 0], sizes = [1, 256], strides = [1, 1]} : vector<7x256xf32> to vector<1x256xf32>
    %c240_i32 = arith.constant 240 : i32
    %185 = tpu.dynamic_rotate %184 by %c240_i32 dim 1 : vector<1x256xf32>, i32 -> vector<1x256xf32>
    %186 = vector.extract_strided_slice %58 {offsets = [4, 0], sizes = [1, 256], strides = [1, 1]} : vector<7x256xf32> to vector<1x256xf32>
    %187 = arith.mulf %185, %186 : vector<1x256xf32>
    %188 = arith.addf %183, %187 : vector<1x256xf32>
    %189 = vector.extract_strided_slice %167 {offsets = [5, 0], sizes = [1, 256], strides = [1, 1]} : vector<7x256xf32> to vector<1x256xf32>
    %c224_i32 = arith.constant 224 : i32
    %190 = tpu.dynamic_rotate %189 by %c224_i32 dim 1 : vector<1x256xf32>, i32 -> vector<1x256xf32>
    %191 = vector.extract_strided_slice %58 {offsets = [5, 0], sizes = [1, 256], strides = [1, 1]} : vector<7x256xf32> to vector<1x256xf32>
    %192 = arith.mulf %190, %191 : vector<1x256xf32>
    %193 = arith.addf %188, %192 : vector<1x256xf32>
    %194 = vector.extract_strided_slice %167 {offsets = [6, 0], sizes = [1, 256], strides = [1, 1]} : vector<7x256xf32> to vector<1x256xf32>
    %c208_i32 = arith.constant 208 : i32
    %195 = tpu.dynamic_rotate %194 by %c208_i32 dim 1 : vector<1x256xf32>, i32 -> vector<1x256xf32>
    %196 = vector.extract_strided_slice %58 {offsets = [6, 0], sizes = [1, 256], strides = [1, 1]} : vector<7x256xf32> to vector<1x256xf32>
    %197 = arith.mulf %195, %196 : vector<1x256xf32>
    %198 = arith.addf %193, %197 : vector<1x256xf32>
    %199 = arith.negf %198 : vector<1x256xf32>
    %200 = math.exp %199 : vector<1x256xf32>
    %cst_38 = arith.constant 1.000000e+00 : f32
    %201 = vector.broadcast %cst_38 : f32 to vector<1x256xf32>
    %202 = arith.addf %201, %200 : vector<1x256xf32>
    %203 = arith.divf %201, %202 : vector<1x256xf32>
    %204 = vector.broadcast %40 : vector<4x1xf32> to vector<4x256xf32>
    %205 = vector.broadcast %203 : vector<1x256xf32> to vector<4x256xf32>
    %206 = arith.addf %204, %205 : vector<4x256xf32>
    %207 = arith.mulf %1, %206 : vector<4x256xf32>
    %208 = vector.broadcast %41 : vector<4x1xf32> to vector<4x256xf32>
    %209 = vector.broadcast %203 : vector<1x256xf32> to vector<4x256xf32>
    %210 = arith.addf %208, %209 : vector<4x256xf32>
    %211 = arith.mulf %10, %210 : vector<4x256xf32>
    %c0_39 = arith.constant 0 : index
    %c0_40 = arith.constant 0 : index
    %c0_41 = arith.constant 0 : index
    %212 = vector.load %arg11[%c0_39, %c0_40, %c0_41] : memref<1x4x256xbf16, #tpu.memory_space<vmem>>, vector<1x4x256xbf16>
    %213 = vector.shape_cast %212 : vector<1x4x256xbf16> to vector<4x256xbf16>
    %c0_42 = arith.constant 0 : index
    %c0_43 = arith.constant 0 : index
    %214 = vector.load %arg12[%c0_42, %c0_43] : memref<4x4xbf16, #tpu.memory_space<vmem>>, vector<4x4xbf16>
    %cst_44 = arith.constant dense<0.000000e+00> : vector<4x256xf32>
    %215 = tpu.matmul %214, %213, %cst_44 {dimension_numbers = #tpu.dot_dimension_numbers<[1], [0], [0], [1], [0, 0, 1, 1], [], []>} : vector<4x4xbf16>, vector<4x256xbf16>, vector<4x256xf32> -> vector<4x256xf32>
    %216 = arith.addf %207, %215 : vector<4x256xf32>
    %c0_45 = arith.constant 0 : index
    %c0_46 = arith.constant 0 : index
    %217 = vector.load %arg14[%c0_45, %c0_46] : memref<4x1xf32, #tpu.memory_space<vmem>>, vector<4x1xf32>
    %218 = vector.broadcast %217 : vector<4x1xf32> to vector<4x256xf32>
    %219 = arith.addf %216, %218 : vector<4x256xf32>
    %c0_47 = arith.constant 0 : index
    %c0_48 = arith.constant 0 : index
    %220 = vector.load %arg13[%c0_47, %c0_48] : memref<4x4xbf16, #tpu.memory_space<vmem>>, vector<4x4xbf16>
    %cst_49 = arith.constant dense<0.000000e+00> : vector<4x256xf32>
    %221 = tpu.matmul %220, %213, %cst_49 {dimension_numbers = #tpu.dot_dimension_numbers<[1], [0], [0], [1], [0, 0, 1, 1], [], []>} : vector<4x4xbf16>, vector<4x256xbf16>, vector<4x256xf32> -> vector<4x256xf32>
    %222 = arith.addf %211, %221 : vector<4x256xf32>
    %c0_50 = arith.constant 0 : index
    %c0_51 = arith.constant 0 : index
    %223 = vector.load %arg15[%c0_50, %c0_51] : memref<4x1xf32, #tpu.memory_space<vmem>>, vector<4x1xf32>
    %224 = vector.broadcast %223 : vector<4x1xf32> to vector<4x256xf32>
    %225 = arith.addf %222, %224 : vector<4x256xf32>
    %c0_52 = arith.constant 0 : index
    %c0_53 = arith.constant 0 : index
    %c0_54 = arith.constant 0 : index
    %c0_55 = arith.constant 0 : index
    %226 = vector.load %arg16[%c0_52, %c0_53, %c0_54, %c0_55] : memref<1x2x4x256xf32, #tpu.memory_space<vmem>>, vector<1x1x4x256xf32>
    %227 = vector.shape_cast %226 : vector<1x1x4x256xf32> to vector<4x256xf32>
    %228 = vector.shape_cast %219 : vector<4x256xf32> to vector<1x1x4x256xf32>
    tpu.vector_store %arg16[%c0_52, %c0_53, %c0_54, %c0_55], %228 {strides = array<i32>} : memref<1x2x4x256xf32, #tpu.memory_space<vmem>>, vector<1x1x4x256xf32>,
    %c0_56 = arith.constant 0 : index
    %c1 = arith.constant 1 : index
    %c0_57 = arith.constant 0 : index
    %c0_58 = arith.constant 0 : index
    %229 = vector.load %arg16[%c0_56, %c1, %c0_57, %c0_58] : memref<1x2x4x256xf32, #tpu.memory_space<vmem>>, vector<1x1x4x256xf32>
    %230 = vector.shape_cast %229 : vector<1x1x4x256xf32> to vector<4x256xf32>
    %231 = vector.shape_cast %225 : vector<4x256xf32> to vector<1x1x4x256xf32>
    tpu.vector_store %arg16[%c0_56, %c1, %c0_57, %c0_58], %231 {strides = array<i32>} : memref<1x2x4x256xf32, #tpu.memory_space<vmem>>, vector<1x1x4x256xf32>,
    return
  }
  func.func @transform_0(%arg0: i32) -> (i32, i32, i32) {
    %c0_i32 = arith.constant 0 : i32
    %c0_i32_0 = arith.constant 0 : i32
    %c0_i32_1 = arith.constant 0 : i32
    return %arg0, %c0_i32, %c0_i32_0 : i32, i32, i32
  }
  func.func @transform_1(%arg0: i32) -> (i32, i32, i32) {
    %c0_i32 = arith.constant 0 : i32
    %c0_i32_0 = arith.constant 0 : i32
    %c0_i32_1 = arith.constant 0 : i32
    return %arg0, %c0_i32, %c0_i32_0 : i32, i32, i32
  }
  func.func @transform_2(%arg0: i32) -> (i32, i32) {
    %c0_i32 = arith.constant 0 : i32
    %c0_i32_0 = arith.constant 0 : i32
    %c0_i32_1 = arith.constant 0 : i32
    return %c0_i32, %c0_i32_0 : i32, i32
  }
  func.func @transform_3(%arg0: i32) -> (i32, i32) {
    %c0_i32 = arith.constant 0 : i32
    %c0_i32_0 = arith.constant 0 : i32
    %c0_i32_1 = arith.constant 0 : i32
    return %c0_i32, %c0_i32_0 : i32, i32
  }
  func.func @transform_4(%arg0: i32) -> (i32, i32) {
    %c0_i32 = arith.constant 0 : i32
    %c0_i32_0 = arith.constant 0 : i32
    %c0_i32_1 = arith.constant 0 : i32
    return %c0_i32, %c0_i32_0 : i32, i32
  }
  func.func @transform_5(%arg0: i32) -> (i32, i32) {
    %c0_i32 = arith.constant 0 : i32
    %c0_i32_0 = arith.constant 0 : i32
    %c0_i32_1 = arith.constant 0 : i32
    return %c0_i32, %c0_i32_0 : i32, i32
  }
  func.func @transform_6(%arg0: i32) -> (i32, i32) {
    %c0_i32 = arith.constant 0 : i32
    %c0_i32_0 = arith.constant 0 : i32
    %c0_i32_1 = arith.constant 0 : i32
    return %c0_i32, %c0_i32_0 : i32, i32
  }
  func.func @transform_7(%arg0: i32) -> (i32, i32) {
    %c0_i32 = arith.constant 0 : i32
    %c0_i32_0 = arith.constant 0 : i32
    %c0_i32_1 = arith.constant 0 : i32
    return %c0_i32, %c0_i32_0 : i32, i32
  }
  func.func @transform_8(%arg0: i32) -> (i32, i32) {
    %c0_i32 = arith.constant 0 : i32
    %c0_i32_0 = arith.constant 0 : i32
    %c0_i32_1 = arith.constant 0 : i32
    return %c0_i32, %c0_i32_0 : i32, i32
  }
  func.func @transform_9(%arg0: i32) -> (i32, i32) {
    %c0_i32 = arith.constant 0 : i32
    %c0_i32_0 = arith.constant 0 : i32
    %c0_i32_1 = arith.constant 0 : i32
    return %c0_i32, %c0_i32_0 : i32, i32
  }
  func.func @transform_10(%arg0: i32) -> (i32, i32, i32) {
    %c0_i32 = arith.constant 0 : i32
    %c0_i32_0 = arith.constant 0 : i32
    %c0_i32_1 = arith.constant 0 : i32
    return %arg0, %c0_i32, %c0_i32_0 : i32, i32, i32
  }
  func.func @transform_11(%arg0: i32) -> (i32, i32) {
    %c0_i32 = arith.constant 0 : i32
    %c0_i32_0 = arith.constant 0 : i32
    %c0_i32_1 = arith.constant 0 : i32
    return %c0_i32, %c0_i32_0 : i32, i32
  }
  func.func @transform_12(%arg0: i32) -> (i32, i32) {
    %c0_i32 = arith.constant 0 : i32
    %c0_i32_0 = arith.constant 0 : i32
    %c0_i32_1 = arith.constant 0 : i32
    return %c0_i32, %c0_i32_0 : i32, i32
  }
  func.func @transform_13(%arg0: i32) -> (i32, i32) {
    %c0_i32 = arith.constant 0 : i32
    %c0_i32_0 = arith.constant 0 : i32
    %c0_i32_1 = arith.constant 0 : i32
    return %c0_i32, %c0_i32_0 : i32, i32
  }
  func.func @transform_14(%arg0: i32) -> (i32, i32) {
    %c0_i32 = arith.constant 0 : i32
    %c0_i32_0 = arith.constant 0 : i32
    %c0_i32_1 = arith.constant 0 : i32
    return %c0_i32, %c0_i32_0 : i32, i32
  }
  func.func @transform_15(%arg0: i32) -> (i32, i32, i32, i32) {
    %c0_i32 = arith.constant 0 : i32
    %c0_i32_0 = arith.constant 0 : i32
    %c0_i32_1 = arith.constant 0 : i32
    %c0_i32_2 = arith.constant 0 : i32
    return %arg0, %c0_i32, %c0_i32_0, %c0_i32_1 : i32, i32, i32, i32
  }
}

</mosaic_0001>

<bundles_post_ra>
// kernel: feafuse_block.1
= control target key start
LH: loop header
LB: loop body
LE: loop exit
PB: predicated region body
PF: predicated region fallthrough
CT: control target
= control target key end

     0   :  { %s1820_s18 = smov 0   ;;  %s2173_s0 = inlined_call_operand.vmem [shape: f32[2,4,256], index: 0, kind: input, shape index: {}]   ;;  %s2174_s1 = inlined_call_operand.vmem [shape: bf16[2,4,256], index: 1, kind: input, shape index: {}]   ;;  %s2175_s2 = inlined_call_operand.vmem [shape: bf16[4,4], index: 2, kind: input, shape index: {}]   ;;  %s2176_s3 = inlined_call_operand.vmem [shape: f32[4,1], index: 3, kind: input, shape index: {}]   ;;  %s2177_s4 = inlined_call_operand.vmem [shape: f32[2,8], index: 4, kind: input, shape index: {}]   ;;  %s2178_s5 = inlined_call_operand.vmem [shape: f32[8,2], index: 5, kind: input, shape index: {}]   ;;  %s2179_s6 = inlined_call_operand.vmem [shape: f32[7,7], index: 6, kind: input, shape index: {}]   ;;  %s2180_s7 = inlined_call_operand.vmem [shape: f32[7,7], index: 7, kind: input, shape index: {}]   ;;  %s2181_s8 = inlined_call_operand.vmem [shape: f32[7,256], index: 8, kind: input, shape index: {}]   ;;  %s2182_s9 = inlined_call_operand.vmem [shape: f32[7,256], index: 9, kind: input, shape index: {}]   ;;  %s2183_s10 = inlined_call_operand.vmem [shape: bf16[2,4,256], index: 10, kind: input, shape index: {}]   ;;  %s2184_s11 = inlined_call_operand.vmem [shape: bf16[4,4], index: 11, kind: input, shape index: {}]   ;;  %s2185_s12 = inlined_call_operand.vmem [shape: bf16[4,4], index: 12, kind: input, shape index: {}]   ;;  %s2186_s13 = inlined_call_operand.vmem [shape: f32[4,1], index: 13, kind: input, shape index: {}]   ;;  %s2187_s14 = inlined_call_operand.vmem [shape: f32[4,1], index: 14, kind: input, shape index: {}]   ;;  %s2188_s15 = inlined_call_operand.vmem [shape: f32[2,2,4,256], index: 15, kind: output, shape index: {}]  }
   0x1 LB: > { %s1605_s19 = sadd.s32 4294967295, %s1716_s18   ;;  %p1609_p0 = scmp.ge.s32.totalorder %s1716_s18, 1  ;;  %s1716_s18 = sphi %s1820_s18, %s25_s18  }
   0x2   : > { %p457_p1 = scmp.lt.s32.totalorder %s1716_s18, 3 }
   0x4   : > { %p458_p2 = pnand %p1609_p0, %p457_p1 }
   0x5   : > { %p515_p3 = scmp.lt.s32.totalorder (!%p458_p2), %s1605_s19, 1  ;;  %s1724_s26 = smov (!%p458_p2), 127  }
   0x6   : > { %461 = sbr.rel (%p458_p2) target bundleno = 1043 (0x413), region = 80  ;;  %s1727_s27 = smov (!%p458_p2), 1  }
   0x7   : > { %s1730_s29 = smov (!%p458_p2), 3   ;;  %s1731_s30 = smov (!%p458_p2), 2  }
   0xb   : > { %v1718_v0 = vmov 0   ;;  %v539_v1 = vld [vmem:[%s2176_s3] sm:$0xf]  ;;  %s2190_s19 = smov (!%p515_p3, %s1605_s19), 1  ;;  %vm558_vm0 = vcmask 1041408   ;;  %vm554_vm1 = vcmask 31744  }
   0xc   : > { %597 = vmatprep.mubr.bf16.mxu0 %v1718_v0  ;;  %1683 = vset.pattern.permute.xlu0 %v1718_v0  ;;  %s1636_s22 = sshll.u32 %s2190_s19, 2  ;;  %v537_v7 = vld [vmem:[%s2175_s2] sm:$0x3]  ;;  %s1635_s16 = sshll.u32 %s2190_s19, 3  ;;  %vm611_vm2 = vcmask 1043456   ;;  %vm861_vm3 = vcmask 1040384  }
   0xd   : > { %542 = vperm.xlu0 %1683, %v539_v1   ;;  %1684 = vset.pattern.permute.xlu1 %v1718_v0  ;;  %s524_s25 = scalar_lea.vmem %s2174_s1, %s1636_s22  ;;  %s529_s28 = scalar_lea.vmem %s2183_s10, %s1636_s22  ;;  %vm1720_vm4 = vmmov 0   ;;  %vm624_vm5 = vcmask 7168   ;;  %vm643_vm6 = vcmask 64512   ;;  %vm719_vm13 = vcmask 15360  }
   0xe   : > { %v1618_v2 = vld.sshfl [vmem:[%s524_s25] sm:$0x33 pattern:$0x76325410]  ;;  %s519_s21 = scalar_lea.vmem %s2173_s0, %s1635_s16  ;;  %s1732_s16 = smov 125  }
   0xf   : > { %v553_v3 = vcombine.high %v1618_v2, %v1618_v2  ;;  %v1843_v4 = vld.sshfl [vmem:[%s529_s28] sm:$0x33 pattern:$0x76325410]  ;;  %v560_v5 = vsel %vm558_vm0, %v1618_v2, 0  ;;  %s1728_s28 = smov 126  }
  0x10   : > { %v1848_v6 = vcombine.high %v1843_v4, %v1843_v4  ;;  %v1862_v8 = vld [vmem:[%s519_s21] sm:$0xff]  ;;  %s1733_s25 = smov 48   ;;  %s1638_s20 = sshll.u32 %s2190_s19, 4 }
  0x11   : > { %1619 = vmatprep.subr.msk.bf16.mxu0 %vm558_vm0, %v553_v3  ;;  %v609_v9 = vcombine.high %v1862_v8, %v1862_v8  ;;  %v612_v10 = vsel %vm611_vm2, %v1862_v8, 0.0  ;;  %v619_v38 = vsel %vm611_vm2, %v1862_v8, -inf  ;;  %s534_s23 = scalar_lea.vmem %s2188_s15, %s1638_s20 }
  0x12   : > { %580 = vmatpush1.bf16.msra.mxu0 %v560_v5  ;;  %v807_v45 = vrot.slane %v612_v10, 4  ;;  %v835_v60 = vrot.slane %v619_v38, 4 }
  0x13   : > { %1630 = vmatprep.subr.msk.bf16.mxu0 %vm558_vm0, %v1848_v6  ;;  %v613_v11 = vsel %vm611_vm2, %v609_v9, 0.0  ;;  %v620_v13 = vsel %vm611_vm2, %v609_v9, -inf }
  0x14   : > { %v614_v12 = vadd.f32 %v613_v11, %v612_v10  ;;  %v813_v14 = vrot.slane %v613_v11, 4  ;;  %v841_v16 = vrot.slane %v620_v13, 4  ;;  %v621_v40 = vmax.f32 %v619_v38, %v620_v13 }
  0x15   : > { %1620 = vmatmul.mubr.msk.bf16.vlgmr.msra.gmra.mxu0 %vm554_vm1, %v537_v7  ;;  %v808_v53 = vadd.f32 %v807_v45, %v612_v10  ;;  %v836_v5 = vmax.f32 %v619_v38, %v835_v60 }
  0x16   : > { %1500 = vmatprep.mubr.bf16.mxu0 %v1718_v0  ;;  %615 = vadd.xlane.f32.xlu1 %v614_v12  ;;  %v814_v18 = vadd.f32 %v813_v14, %v613_v11  ;;  %v842_v21 = vmax.f32 %v620_v13, %v841_v16  ;;  %v1719_v11 = vmov 0.0   ;;  %v864_v14 = vld [vmem:[%s2179_s6] sm:$0x7f] }
  0x17   : > { %v809_v62 = vrot.slane %v808_v53, 2  ;;  %1643 = vmatprep.subr.mxu1 %v1719_v11  ;;  %v837_v13 = vrot.slane %v836_v5, 2  ;;  %1645 = vmatprep.mubr.msk.f32.mxu1 %vm1720_vm4, %v1719_v11 }
  0x18   : > { %v815_v25 = vrot.slane %v814_v18, 2  ;;  %v843_v28 = vrot.slane %v842_v21, 2 }
  0x19   : > { %v810_v9 = vadd.f32 %v809_v62, %v808_v53 }
  0x1a   : > { %v816_v33 = vadd.f32 %v815_v25, %v814_v18  ;;  %v844_v41 = vmax.f32 %v842_v21, %v843_v28  ;;  %v1721_v25 = vmov 1  }
  0x1c   : > { %v817_v43 = vrot.slane %v816_v33, 1  ;;  %v845_v49 = vrot.slane %v844_v41, 1 }
  0x1e   : > { %v818_v51 = vadd.f32 %v817_v43, %v816_v33  ;;  %v846_v57 = vmax.f32 %v844_v41, %v845_v49 }
  0x88   : > { %v543_v15 = vpop.permute.xlu0 %542 }
  0x9f   : > { %v616_v38 = vpop.xlane.xlu1 %615 }
  0xd5   : > { %v599_v17 = vpop.f32.mrf.mxu0 }
  0xd6   : > { %v600_v19 = vadd.f32 %v599_v17, %v543_v15  ;;  %v865_v17 = vld [vmem:[%s2180_s7] sm:$0x7f] }
  0xd7   : > { %v601_v20 = vpop.f32.mrf.mxu0 }
  0xd8   : > { %v1870_v22 = vmax.f32 %v600_v19, 0.0  ;;  %v602_v23 = vadd.f32 %v601_v20, %v543_v15  ;;  %v811_v15 = vrot.slane %v810_v9, 1  ;;  %v838_v19 = vmax.f32 %v836_v5, %v837_v13 }
  0xd9   : > { %v603_v24 = vpop.f32.mrf.mxu0 }
  0xda   : > { %v1872_v26 = vmax.f32 %v602_v23, 0.0  ;;  %v626_v29 = vsel %vm611_vm2, %v1870_v22, 0.0  ;;  %v632_v31 = vsel %vm611_vm2, %v1870_v22, -inf  ;;  %v812_v20 = vadd.f32 %v811_v15, %v810_v9 }
  0xdb   : > { %v604_v27 = vpop.f32.mrf.mxu0  ;;  %v819_v46 = vrot.slane %v626_v29, 4  ;;  %v847_v58 = vrot.slane %v632_v31, 4  ;;  %v839_v24 = vrot.slane %v838_v19, 1 }
  0xdc   : > { %v627_v30 = vsel %vm611_vm2, %v1872_v26, 0.0  ;;  %v633_v32 = vsel %vm611_vm2, %v1872_v26, -inf  ;;  %v1722_v27 = vmov 2  }
  0xdd   : > { %v628_v34 = vadd.f32 %v627_v30, %v626_v29  ;;  %v825_v35 = vrot.slane %v627_v30, 4  ;;  %v634_v36 = vmax.f32 %v632_v31, %v633_v32  ;;  %v853_v37 = vrot.slane %v633_v32, 4 }
  0xde   : > { %v820_v54 = vadd.f32 %v819_v46, %v626_v29  ;;  %v848_v3 = vmax.f32 %v632_v31, %v847_v58  ;;  %v874_v58 = vlaneseq }
  0xdf   : > { %v826_v39 = vadd.f32 %v825_v35, %v627_v30  ;;  %629 = vadd.xlane.f32.xlu0 %v628_v34  ;;  %635 = vmax.xlane.f32.xlu1 %v634_v36  ;;  %v854_v42 = vmax.f32 %v633_v32, %v853_v37  ;;  %v840_v30 = vmax.f32 %v838_v19, %v839_v24  ;;  %v1723_v32 = vmov 4  }
  0xe0   : > { %v821_v63 = vrot.slane %v820_v54, 2  ;;  %v849_v12 = vrot.slane %v848_v3, 2  ;;  %v1725_v35 = vmov 5   ;;  %v1726_v36 = vmov 3  }
  0xe1   : > { %v827_v44 = vrot.slane %v826_v39, 2  ;;  %v855_v47 = vrot.slane %v854_v42, 2  ;;  %v1729_v37 = vmov 6   ;;  %v1940_v60 = vshrl.u32 %v874_v58, 7 }
  0xe2   : > { %v822_v10 = vadd.f32 %v821_v63, %v820_v54  ;;  %v850_v18 = vmax.f32 %v848_v3, %v849_v12  ;;  %v1944_v63 = vand.u32 127, %v874_v58 }
  0xe3   : > { %v828_v48 = vadd.f32 %v827_v44, %v826_v39  ;;  %622 = vmax.xlane.f32.xlu1 %v621_v40  ;;  %v856_v50 = vmax.f32 %v854_v42, %v855_v47  ;;  %v618_v42 = vmul.f32 0.00390625, %v616_v38  ;;  %v642_v47 = vld [vmem:[%s2177_s4] sm:$0x3]  ;;  %v1960_v13 = vsub.s32 1, %v1940_v60 }
  0xe4   : > { %v823_v16 = vrot.slane %v822_v10, 1  ;;  %v851_v23 = vrot.slane %v850_v18, 1  ;;  %vm976_vm7 = vcmp.lt.s32.totalorder %v1944_v63, 1  ;;  %vm876_vm8 = vcmp.lt.s32.totalorder %v1944_v63, 3 }
  0xe5   : > { %v829_v52 = vrot.slane %v828_v48, 1  ;;  %v857_v55 = vrot.slane %v856_v50, 1  ;;  %vm927_vm9 = vcmp.lt.s32.totalorder %v1944_v63, 2  ;;  %vm1106_vm10 = vcmp.lt.s32.totalorder %v1944_v63, 126 }
  0xe6   : > { %v824_v21 = vadd.f32 %v823_v16, %v822_v10  ;;  %v852_v29 = vmax.f32 %v850_v18, %v851_v23  ;;  %v1062_v58 = vsub.s32 4, %v1940_v60  ;;  %vm1057_vm11 = vcmp.lt.s32.totalorder %v1944_v63, 127 }
  0xe7   : > { %v830_v56 = vadd.f32 %v829_v52, %v828_v48  ;;  %v858_v59 = vmax.f32 %v856_v50, %v857_v55  ;;  %vm1155_vm12 = vcmp.lt.s32.totalorder %v1944_v63, 125  ;;  %vm1204_vm14 = vcmp.lt.s32.totalorder %v1944_v63, 48 }
  0xe8   : > { %v831_v28 = vadd.f32 %v824_v21, %v812_v20  ;;  %v859_v33 = vmax.f32 %v840_v30, %v852_v29  ;;  %v1111_v29 = vsub.s32 5, %v1940_v60  ;;  %vm1227_vm15 = vcmp.lt.s32.totalorder %v1944_v63, 32 }
  0xe9   : > { %v832_v61 = vadd.f32 %v830_v56, %v818_v51  ;;  %v860_v2 = vmax.f32 %v846_v57, %v858_v59 }
  0xea   : > { %v833_v31 = vmul.f32 0.125, %v831_v28 }
  0xeb   : > { %v834_v1 = vmul.f32 0.125, %v832_v61 }
  0xec   : > { %v1897_v34 = vsel %vm861_vm3, %v833_v31, %v859_v33 }
  0xed   : > { %v1885_v7 = vsel %vm861_vm3, %v834_v1, %v860_v2  ;;  %v981_v1 = vsub.s32 2, %v1940_v60  ;;  %v1950_v2 = vld [vmem:[%s2181_s8 + $0x8] sm:$0x7f]  ;;  %v1044_v33 = vrot.slane %v1897_v34, %v1960_v13  ;;  %vm1329_vm3 = vcmp.lt.s32.totalorder %v1944_v63, 80 }
  0xef   : > { %v986_v5 = vrot.slane %v1950_v2, %v981_v1 }
  0xf4   : > { %891 = vperm.xlu1 %1684, %v864_v14  }
  0xf5   : > { %908 = vperm.xlu0 %1683, %v865_v17  }
  0xf8   : > { %1685 = vset.pattern.permute.xlu1 %v1721_v25 }
  0xf9   : > { %1687 = vset.pattern.permute.xlu0 %v1722_v27  ;;  %941 = vperm.xlu1 %1685, %v864_v14  }
  0xfa   : > { %1006 = vperm.xlu0 %1687, %v865_v17  }
  0xfd   : > { %957 = vperm.xlu1 %1685, %v865_v17  }
  0xfe   : > { %1689 = vset.pattern.permute.xlu0 %v1723_v32 }
  0xff   : > { %1071 = vperm.xlu0 %1689, %v864_v14  }
 0x101   : > { %1686 = vset.pattern.permute.xlu1 %v1722_v27 }
 0x102   : > { %990 = vperm.xlu1 %1686, %v864_v14  }
 0x103   : > { %1053 = vrot.lane.b32.xlu0 %v1897_v34, %s1724_s26 }
 0x104   : > { %1692 = vset.pattern.permute.xlu0 %v1725_v35 }
 0x106   : > { %1688 = vset.pattern.permute.xlu1 %v1726_v36 }
 0x107   : > { %974 = vrot.lane.b32.xlu0 %v1885_v7, %s1727_s27  ;;  %1022 = vperm.xlu1 %1688, %v864_v14  }
 0x10b   : > { %1136 = vperm.xlu0 %1692, %v865_v17   ;;  %1038 = vperm.xlu1 %1688, %v865_v17  }
 0x10f   : > { %1104 = vrot.lane.b32.xlu0 %v1885_v7, %s1728_s28  ;;  %1690 = vset.pattern.permute.xlu1 %v1723_v32 }
 0x110   : > { %1087 = vperm.xlu1 %1690, %v865_v17   ;;  %1693 = vset.pattern.permute.xlu0 %v1729_v37 }
 0x113   : > { %1169 = vperm.xlu0 %1693, %v864_v14  }
 0x114   : > { %870 = vrot.lane.b32.xlu1 %v1897_v34, %s1730_s29 }
 0x115   : > { %1691 = vset.pattern.permute.xlu1 %v1725_v35 }
 0x117   : > { %1695 = vset.pattern.permute.xlu0 %v1718_v0 }
 0x118   : > { %923 = vrot.lane.b32.xlu1 %v1897_v34, %s1731_s30 }
 0x11c   : > { %972 = vrot.lane.b32.xlu1 %v1897_v34, %s1727_s27  ;;  %s1734_s27 = smov 32  }
 0x120   : > { %872 = vrot.lane.b32.xlu1 %v1885_v7, %s1730_s29  ;;  %s1736_s29 = smov 112  }
 0x124   : > { %925 = vrot.lane.b32.xlu1 %v1885_v7, %s1731_s30  ;;  %s1737_s30 = smov 96  }
 0x128   : > { %1102 = vrot.lane.b32.xlu1 %v1897_v34, %s1728_s28  ;;  %s1735_s28 = smov 16  }
 0x12c   : > { %1120 = vperm.xlu1 %1691, %v864_v14   ;;  %v1965_v14 = vld [vmem:[%s2181_s8] sm:$0x7f] }
 0x12d   : > { %v982_v30 = vrot.slane %v1965_v14, %v981_v1  ;;  %v933_v36 = vrot.slane %v1965_v14, %v1960_v13 }
 0x130   : > { %1055 = vrot.lane.b32.xlu1 %v1885_v7, %s1724_s26 }
 0x131   : > { %1694 = vset.pattern.permute.xlu1 %v1729_v37  ;;  %v937_v37 = vrot.slane %v1950_v2, %v1960_v13 }
 0x134   : > { %1151 = vrot.lane.b32.xlu1 %v1897_v34, %s1732_s16 }
 0x138   : > { %1153 = vrot.lane.b32.xlu1 %v1885_v7, %s1732_s16  ;;  %s1738_s16 = smov 80  }
 0x13c   : > { %1185 = vperm.xlu1 %1694, %v865_v17  }
 0x140   : > { %1696 = vset.pattern.permute.xlu1 %v1718_v0 }
 0x168   : > { %v630_v39 = vpop.xlane.xlu0 %629  ;;  %v636_v40 = vpop.xlane.xlu1 %635 }
 0x169   : > { %v631_v41 = vmul.f32 0.00390625, %v630_v39 }
 0x16b   : > { %v637_v43 = vsel %vm624_vm5, %v631_v41, %v636_v40 }
 0x16c   : > { %v639_v44 = vrot.slane %v637_v43, 4  ;;  %v623_v45 = vpop.xlane.xlu1 %622 }
 0x16d   : > { %v625_v46 = vsel %vm624_vm5, %v618_v42, %v623_v45  ;;  %v1116_v45 = vrot.slane %v1950_v2, %v1111_v29 }
 0x16e   : > { %v641_v48 = vsel %vm611_vm2, %v625_v46, %v639_v44  ;;  %vm1304_vm2 = vcmp.lt.s32.totalorder %v1944_v63, 96 }
 0x16f   : > { %1644 = vmatpush3.msra.mxu1 %v641_v48 }
 0x170   : > { %1646 = vmatmul.mubr.msk.f32.vlgmr.msra.gmra.mxu1 %vm643_vm6, %v642_v47  ;;  %v1919_v49 = vpop.permute.xlu1 %891  ;;  %1648 = vmatprep.subr.mxu1 %v1719_v11  ;;  %v909_v53 = vpop.permute.xlu0 %908 }
 0x171   : > { %1650 = vmatprep.mubr.msk.f32.mxu1 %vm1720_vm4, %v1719_v11  ;;  %v1955_v11 = vsub.s32 0, %v1940_v60 }
 0x173   : > { %v882_v16 = vrot.slane %v1965_v14, %v1955_v11  ;;  %v886_v17 = vrot.slane %v1950_v2, %v1955_v11  ;;  %v1028_v24 = vrot.slane %v1897_v34, %v1955_v11 }
 0x174   : > { %v1924_v50 = vpop.permute.xlu1 %941 }
 0x175   : > { %v1932_v55 = vpop.permute.xlu0 %1006 }
 0x178   : > { %v1926_v51 = vpop.permute.xlu1 %957 }
 0x17a   : > { %v1936_v57 = vpop.permute.xlu0 %1071 }
 0x17d   : > { %v1928_v52 = vpop.permute.xlu1 %990 }
 0x17e   : > { %v1942_v62 = vpop.permute.xlu0 %1053 }
 0x182   : > { %v1930_v54 = vpop.permute.xlu1 %1022  ;;  %v975_v9 = vpop.permute.xlu0 %974 }
 0x186   : > { %v1934_v56 = vpop.permute.xlu1 %1038  ;;  %v1976_v25 = vpop.permute.xlu0 %1136 }
 0x18b   : > { %v1938_v59 = vpop.permute.xlu1 %1087 }
 0x18f   : > { %v871_v61 = vpop.permute.xlu1 %870 }
 0x193   : > { %v924_v3 = vpop.permute.xlu1 %923 }
 0x197   : > { %v973_v10 = vpop.permute.xlu1 %972 }
 0x198   : > { %v977_v12 = vsel %vm976_vm7, %v973_v10, %v975_v9  ;;  %v978_v35 = vsel %vm976_vm7, %v975_v9, %v973_v10 }
 0x199   : > { %v988_v15 = vmul.f32 %v986_v5, %v977_v12  ;;  %v987_v46 = vmul.f32 %v982_v30, %v978_v35 }
 0x19b   : > { %v1000_v18 = vrot.slane %v988_v15, %v1955_v11  ;;  %v1016_v19 = vrot.slane %v988_v15, %v1960_v13  ;;  %v873_v20 = vpop.permute.xlu1 %872  ;;  %v1048_v15 = vrot.slane %v1885_v7, %v1960_v13 }
 0x19c   : > { %v877_v21 = vsel %vm876_vm8, %v871_v61, %v873_v20  ;;  %v878_v23 = vsel %vm876_vm8, %v873_v20, %v871_v61  ;;  %v1105_v61 = vpop.permute.xlu0 %1104  ;;  %v996_v20 = vrot.slane %v987_v46, %v1955_v11 }
 0x19d   : > { %v1979_v27 = vmul.f32 %v1000_v18, %v1928_v52  ;;  %v1982_v28 = vmul.f32 %v1016_v19, %v1932_v55  ;;  %v887_v31 = vmul.f32 %v882_v16, %v878_v23  ;;  %v888_v32 = vmul.f32 %v886_v17, %v877_v21 }
 0x19e   : > { %v1063_v23 = vrot.slane %v1965_v14, %v1062_v58 }
 0x19f   : > { %v926_v38 = vpop.permute.xlu1 %925  ;;  %v897_v39 = vrot.slane %v887_v31, %v1955_v11  ;;  %v901_v40 = vrot.slane %v888_v32, %v1955_v11  ;;  %v914_v41 = vrot.slane %v887_v31, %v1960_v13  ;;  %v918_v42 = vrot.slane %v888_v32, %v1960_v13 }
 0x1a0   : > { %v928_v43 = vsel %vm927_vm9, %v924_v3, %v926_v38  ;;  %v929_v44 = vsel %vm927_vm9, %v926_v38, %v924_v3  ;;  %v1032_v3 = vrot.slane %v1885_v7, %v1955_v11 }
 0x1a1   : > { %v903_v47 = vmul.f32 %v901_v40, %v1919_v49  ;;  %v920_v48 = vmul.f32 %v918_v42, %v909_v53  ;;  %v902_v1 = vmul.f32 %v897_v39, %v1919_v49  ;;  %v919_v5 = vmul.f32 %v914_v41, %v909_v53 }
 0x1a2   : > { %v938_v9 = vmul.f32 %v933_v36, %v929_v44  ;;  %v939_v10 = vmul.f32 %v937_v37, %v928_v43  ;;  %v1012_v36 = vrot.slane %v987_v46, %v1960_v13  ;;  %v1160_v39 = vsub.s32 6, %v1940_v60 }
 0x1a3   : > { %v1103_v12 = vpop.permute.xlu1 %1102  ;;  %v922_v16 = vadd.f32 %v920_v48, %v903_v47  ;;  %v921_v7 = vadd.f32 %v919_v5, %v902_v1  ;;  %v1067_v43 = vrot.slane %v1950_v2, %v1062_v58  ;;  %v1112_v44 = vrot.slane %v1965_v14, %v1111_v29 }
 0x1a4   : > { %v1108_v17 = vsel %vm1106_vm10, %v1105_v61, %v1103_v12  ;;  %v947_v18 = vrot.slane %v938_v9, %v1955_v11  ;;  %v951_v19 = vrot.slane %v939_v10, %v1955_v11  ;;  %v963_v49 = vrot.slane %v938_v9, %v1960_v13 }
 0x1a5   : > { %v967_v53 = vrot.slane %v939_v10, %v1960_v13  ;;  %v1118_v21 = vmul.f32 %v1116_v45, %v1108_v17  ;;  %v1001_v46 = vmul.f32 %v996_v20, %v1928_v52  ;;  %v1107_v1 = vsel %vm1106_vm10, %v1103_v12, %v1105_v61 }
 0x1a6   : > { %v952_v30 = vmul.f32 %v947_v18, %v1924_v50  ;;  %v953_v31 = vmul.f32 %v951_v19, %v1924_v50  ;;  %v968_v42 = vmul.f32 %v963_v49, %v1926_v51  ;;  %v1017_v9 = vmul.f32 %v1012_v36, %v1932_v55 }
 0x1a7   : > { %v969_v32 = vmul.f32 %v967_v53, %v1926_v51  ;;  %v1121_v35 = vpop.permute.xlu1 %1120  ;;  %v1146_v37 = vrot.slane %v1118_v21, %v1960_v13  ;;  %v1130_v38 = vrot.slane %v1118_v21, %v1955_v11  ;;  %v1161_v58 = vrot.slane %v1965_v14, %v1160_v39 }
 0x1a8   : > { %v954_v40 = vadd.f32 %v952_v30, %v921_v7  ;;  %v955_v41 = vadd.f32 %v953_v31, %v922_v16  ;;  %v1033_v55 = vmul.f32 %v1028_v24, %v1930_v54  ;;  %v1034_v61 = vmul.f32 %v1032_v3, %v1930_v54 }
 0x1a9   : > { %v1148_v50 = vmul.f32 %v1146_v37, %v1976_v25  ;;  %v1132_v45 = vmul.f32 %v1130_v38, %v1121_v35  ;;  %v1117_v12 = vmul.f32 %v1112_v44, %v1107_v1  ;;  %v1165_v18 = vrot.slane %v1950_v2, %v1160_v39 }
 0x1aa   : > { %v970_v47 = vadd.f32 %v968_v42, %v954_v40  ;;  %v971_v48 = vadd.f32 %v969_v32, %v955_v41  ;;  %v1049_v53 = vmul.f32 %v1044_v33, %v1934_v56  ;;  %v1050_v24 = vmul.f32 %v1048_v15, %v1934_v56  ;;  %v1170_v40 = vpop.permute.xlu0 %1169 }
 0x1ab   : > { %v1056_v5 = vpop.permute.xlu1 %1055  ;;  %v1142_v33 = vrot.slane %v1117_v12, %v1960_v13 }
 0x1ac   : > { %v1058_v51 = vsel %vm1057_vm11, %v1942_v62, %v1056_v5  ;;  %v1059_v29 = vsel %vm1057_vm11, %v1056_v5, %v1942_v62  ;;  %v1003_v10 = vadd.f32 %v1001_v46, %v970_v47  ;;  %v1004_v52 = vadd.f32 %v1979_v27, %v971_v48 }
 0x1ad   : > { %v1068_v16 = vmul.f32 %v1063_v23, %v1058_v51  ;;  %v1069_v17 = vmul.f32 %v1067_v43, %v1059_v29  ;;  %v1126_v23 = vrot.slane %v1117_v12, %v1955_v11 }
 0x1ae   : > { %v1019_v19 = vadd.f32 %v1017_v9, %v1003_v10  ;;  %v1020_v62 = vadd.f32 %v1982_v28, %v1004_v52 }
 0x1af   : > { %v1077_v14 = vrot.slane %v1068_v16, %v1955_v11  ;;  %v1081_v49 = vrot.slane %v1069_v17, %v1955_v11  ;;  %v1152_v27 = vpop.permute.xlu1 %1151  ;;  %v1093_v54 = vrot.slane %v1068_v16, %v1960_v13  ;;  %v1097_v3 = vrot.slane %v1069_v17, %v1960_v13 }
 0x1b0   : > { %v1035_v2 = vadd.f32 %v1033_v55, %v1019_v19  ;;  %v1036_v20 = vadd.f32 %v1034_v61, %v1020_v62  ;;  %v1131_v39 = vmul.f32 %v1126_v23, %v1121_v35  ;;  %v1399_v62 = vsel %vm558_vm0, %v1843_v4, 0 }
 0x1b1   : > { %v1082_v28 = vmul.f32 %v1077_v14, %v1936_v57  ;;  %v1083_v21 = vmul.f32 %v1081_v49, %v1936_v57  ;;  %v1099_v7 = vmul.f32 %v1097_v3, %v1938_v59  ;;  %v1098_v56 = vmul.f32 %v1093_v54, %v1938_v59  ;;  %1483 = vmatpush1.bf16.msra.mxu0 %v1399_v62  ;;  %v1385_v14 = vld [vmem:[%s2184_s11] sm:$0x3] }
 0x1b2   : > { %v1051_v30 = vadd.f32 %v1049_v53, %v1035_v2  ;;  %v1052_v31 = vadd.f32 %v1050_v24, %v1036_v20  ;;  %v1147_v59 = vmul.f32 %v1142_v33, %v1976_v25  ;;  %v1464_v49 = vld [vmem:[%s2185_s12] sm:$0x3] }
 0x1b3   : > { %v1154_v34 = vpop.permute.xlu1 %1153  ;;  %v1450_v3 = vld [vmem:[%s2186_s13] sm:$0xf] }
 0x1b4   : > { %v1156_v15 = vsel %vm1155_vm12, %v1152_v27, %v1154_v34  ;;  %v1157_v32 = vsel %vm1155_vm12, %v1154_v34, %v1152_v27  ;;  %v1084_v36 = vadd.f32 %v1082_v28, %v1051_v30  ;;  %v1085_v37 = vadd.f32 %v1083_v21, %v1052_v31  ;;  %1631 = vmatmul.mubr.msk.bf16.vlgmr.msra.gmra.mxu0 %vm554_vm1, %v1464_v49  ;;  %v1511_v2 = vld [vmem:[%s2187_s14] sm:$0xf] }
 0x1b5   : > { %v1166_v57 = vmul.f32 %v1161_v58, %v1156_v15  ;;  %v1167_v38 = vmul.f32 %v1165_v18, %v1157_v32  ;;  %v718_v18 = vld [vmem:[%s2178_s5] sm:$0xff] }
 0x1b6   : > { %v1100_v41 = vadd.f32 %v1098_v56, %v1084_v36  ;;  %v1101_v42 = vadd.f32 %v1099_v7, %v1085_v37 }
 0x1b7   : > { %v1175_v43 = vrot.slane %v1166_v57, %v1955_v11  ;;  %v1179_v44 = vrot.slane %v1167_v38, %v1955_v11  ;;  %v1191_v46 = vrot.slane %v1166_v57, %v1960_v13  ;;  %v1195_v47 = vrot.slane %v1167_v38, %v1960_v13  ;;  %v1186_v51 = vpop.permute.xlu1 %1185 }
 0x1b8   : > { %v1133_v48 = vadd.f32 %v1131_v39, %v1100_v41  ;;  %v1134_v1 = vadd.f32 %v1132_v45, %v1101_v42 }
 0x1b9   : > { %v1180_v5 = vmul.f32 %v1175_v43, %v1170_v40  ;;  %v1181_v9 = vmul.f32 %v1179_v44, %v1170_v40  ;;  %v1196_v52 = vmul.f32 %v1191_v46, %v1186_v51  ;;  %v1197_v16 = vmul.f32 %v1195_v47, %v1186_v51  ;;  %v868_v46 = vld [vmem:[%s2182_s9] sm:$0x7f] }
 0x1ba   : > { %v1149_v29 = vadd.f32 %v1147_v59, %v1133_v48  ;;  %v1150_v35 = vadd.f32 %v1148_v50, %v1134_v1  ;;  %v869_v48 = vld [vmem:[%s2182_s9 + $0x8] sm:$0x7f] }
 0x1bb   : > { %v1233_v51 = vrot.slane %v869_v48, 1 }
 0x1bc   : > { %v1182_v58 = vadd.f32 %v1180_v5, %v1149_v29  ;;  %v1183_v10 = vadd.f32 %v1181_v9, %v1150_v35  ;;  %v1232_v5 = vrot.slane %v868_v46, 1 }
 0x1be   : > { %v2072_v17 = vadd.f32 %v1196_v52, %v1182_v58  ;;  %v2074_v11 = vadd.f32 %v1197_v16, %v1183_v10  ;;  %v1257_v52 = vrot.slane %v868_v46, 2 }
 0x1c0   : > { %1200 = vrot.lane.b32.xlu0 %v2072_v17, %s1733_s25  ;;  %v1219_v13 = vrot.slane %v2072_v17, 1  ;;  %v1246_v25 = vrot.slane %v2072_v17, 2  ;;  %v1271_v50 = vrot.slane %v2072_v17, 4  ;;  %v1296_v45 = vrot.slane %v2072_v17, 5 }
 0x1c1   : > { %v1321_v55 = vrot.slane %v2072_v17, 6  ;;  %v1220_v4 = vrot.slane %v2074_v11, 1  ;;  %v1247_v27 = vrot.slane %v2074_v11, 2  ;;  %v1272_v53 = vrot.slane %v2074_v11, 4 }
 0x1c2   : > { %v1297_v24 = vrot.slane %v2074_v11, 5  ;;  %v1322_v54 = vrot.slane %v2074_v11, 6 }
 0x1c4   : > { %1223 = vrot.lane.b32.xlu0 %v1219_v13, %s1734_s27  ;;  %v1258_v13 = vrot.slane %v869_v48, 2 }
 0x1c8   : > { %1250 = vrot.lane.b32.xlu0 %v1246_v25, %s1735_s28 }
 0x1cc   : > { %1275 = vrot.lane.b32.xlu0 %v1271_v50, %s1736_s29 }
 0x1d0   : > { %1300 = vrot.lane.b32.xlu0 %v1296_v45, %s1737_s30 }
 0x1d4   : > { %1325 = vrot.lane.b32.xlu0 %v1321_v55, %s1738_s16  ;;  %v1282_v55 = vrot.slane %v868_v46, 4 }
 0x230   : > { %v713_v61 = vpop.f32.mrf.mxu1 }
 0x231   : > { %v717_v12 = vmax.f32 %v713_v61, 0.0 }
 0x232   : > { %v1647_v19 = vpop.f32.mrf.mxu1  ;;  %v1201_v39 = vpop.permute.xlu0 %1200 }
 0x233   : > { %1649 = vmatpush3.msk.msra.mxu1 %vm558_vm0, %v717_v12  ;;  %v1283_v12 = vrot.slane %v869_v48, 4  ;;  %v1307_v19 = vrot.slane %v868_v46, 5 }
 0x234   : > { %1651 = vmatmul.mubr.msk.f32.vlgmr.msra.gmra.mxu1 %vm719_vm13, %v718_v18  ;;  %1628 = vmatprep.subr.msk.bf16.mxu1 %vm558_vm0, %v1848_v6  ;;  %vm1254_vm0 = vcmp.lt.s32.totalorder %v1944_v63, 16 }
 0x235   : > { %1436 = vmatprep.mubr.bf16.mxu1 %v1718_v0  ;;  %1419 = vmatpush1.bf16.msra.mxu1 %v1399_v62 }
 0x236   : > { %v1224_v41 = vpop.permute.xlu0 %1223 }
 0x238   : > { %1629 = vmatmul.mubr.msk.bf16.vlgmr.msra.gmra.mxu1 %vm554_vm1, %v1385_v14  ;;  %vm1279_vm1 = vcmp.lt.s32.totalorder %v1944_v63, 112 }
 0x23a   : > { %v1251_v43 = vpop.permute.xlu0 %1250 }
 0x23e   : > { %v1276_v59 = vpop.permute.xlu0 %1275 }
 0x242   : > { %v1301_v35 = vpop.permute.xlu0 %1300 }
 0x274   : > { %v2126_v31 = vpop.f32.mrf.mxu0 }
 0x276   : > { %v2130_v56 = vpop.f32.mrf.mxu0 }
 0x278   : > { %v1506_v32 = vpop.f32.mrf.mxu0 }
 0x27a   : > { %v1507_v57 = vpop.f32.mrf.mxu0 }
 0x2f4   : > { %v792_v6 = vpop.f32.mrf.mxu1 }
 0x2f5   : > { %797 = vrot.lane.b32.xlu1 %v792_v6, %s1724_s26 }
 0x2f6   : > { %v1652_v0 = vpop.f32.mrf.mxu1 }
 0x2f8   : > { %v2124_v30 = vpop.f32.mrf.mxu1 }
 0x2f9   : > { %1202 = vrot.lane.b32.xlu1 %v2074_v11, %s1733_s25 }
 0x2fa   : > { %v2128_v33 = vpop.f32.mrf.mxu1 }
 0x2fb   : > { %v1447_v36 = vcombine.low %v2124_v30, %v2128_v33 }
 0x2fc   : > { %v1442_v15 = vpop.f32.mrf.mxu1 }
 0x2fd   : > { %1225 = vrot.lane.b32.xlu1 %v1220_v4, %s1734_s27 }
 0x2fe   : > { %v1443_v37 = vpop.f32.mrf.mxu1 }
 0x301   : > { %1252 = vrot.lane.b32.xlu1 %v1247_v27, %s1735_s28  ;;  %v1308_v27 = vrot.slane %v869_v48, 5 }
 0x305   : > { %1277 = vrot.lane.b32.xlu1 %v1272_v53, %s1736_s29 }
 0x309   : > { %1302 = vrot.lane.b32.xlu1 %v1297_v24, %s1737_s30  ;;  %v1326_v24 = vpop.permute.xlu0 %1325 }
 0x30d   : > { %1327 = vrot.lane.b32.xlu1 %v1322_v54, %s1738_s16 }
 0x311   : > { %1453 = vperm.xlu1 %1696, %v1450_v3  }
 0x315   : > { %1514 = vperm.xlu1 %1696, %v1511_v2  }
 0x367   : > { %v798_v20 = vpop.permute.xlu1 %797 }
 0x368   : > { %v800_v28 = vadd.f32 %v798_v20, %v792_v6  ;;  %v1332_v20 = vrot.slane %v868_v46, 6 }
 0x36a   : > { %v1624_v21 = vmul.f32 -1.442695, %v800_v28 }
 0x36b   : > { %v1203_v38 = vpop.permute.xlu1 %1202 }
 0x36c   : > { %1698 = vpow2.f32 %v1624_v21  ;;  %v1206_v47 = vsel %vm1204_vm14, %v1203_v38, %v1201_v39  ;;  %v1205_v1 = vsel %vm1204_vm14, %v1201_v39, %v1203_v38 }
 0x36d   : > { %v1207_v58 = vmul.f32 %v1206_v47, %v868_v46  ;;  %v1208_v16 = vmul.f32 %v1205_v1, %v869_v48 }
 0x36f   : > { %v1226_v40 = vpop.permute.xlu1 %1225  ;;  %v1211_v62 = vrot.slane %v1207_v58, 5  ;;  %v1212_v0 = vrot.slane %v1208_v16, 5 }
 0x370   : > { %v1229_v29 = vsel %vm1227_vm15, %v1226_v40, %v1224_v41  ;;  %v1228_v10 = vsel %vm1227_vm15, %v1224_v41, %v1226_v40 }
 0x371   : > { %v1236_v50 = vmul.f32 %v1232_v5, %v1229_v29  ;;  %v1237_v61 = vmul.f32 %v1233_v51, %v1228_v10  ;;  %v1216_v57 = vadd.f32 %v1212_v0, %v2074_v11 }
 0x373   : > { %v1253_v42 = vpop.permute.xlu1 %1252  ;;  %v1240_v54 = vrot.slane %v1236_v50, 5  ;;  %v1241_v28 = vrot.slane %v1237_v61, 5 }
 0x374   : > { %v1256_v25 = vsel %vm1254_vm0, %v1253_v42, %v1251_v43  ;;  %v1255_v45 = vsel %vm1254_vm0, %v1251_v43, %v1253_v42 }
 0x375   : > { %v1261_v14 = vmul.f32 %v1257_v52, %v1256_v25  ;;  %v1262_v4 = vmul.f32 %v1258_v13, %v1255_v45  ;;  %v1245_v43 = vadd.f32 %v1241_v28, %v1216_v57  ;;  %v1365_v45 = vsub.s32 3, %v1940_v60 }
 0x377   : > { %v1278_v44 = vpop.permute.xlu1 %1277  ;;  %v1265_v15 = vrot.slane %v1261_v14, 5  ;;  %v1266_v38 = vrot.slane %v1262_v4, 5 }
 0x378   : > { %v1280_v18 = vsel %vm1279_vm1, %v1276_v59, %v1278_v44  ;;  %v1281_v49 = vsel %vm1279_vm1, %v1278_v44, %v1276_v59 }
 0x379   : > { %v1699_v23 = vpop.eup %1698  ;;  %v1286_v3 = vmul.f32 %v1282_v55, %v1280_v18  ;;  %v1287_v21 = vmul.f32 %v1283_v12, %v1281_v49  ;;  %v1739_v55 = vmov 839922192  }
 0x37a   : > { %v804_v7 = vadd.f32 1.0, %v1699_v23  ;;  %v1333_v23 = vrot.slane %v869_v48, 6  ;;  %v1270_v48 = vadd.f32 %v1266_v38, %v1245_v43  ;;  %v1456_v61 = vunpack.c.l.s4 %v1739_v55 }
 0x37b   : > { %v1303_v9 = vpop.permute.xlu1 %1302  ;;  %v1290_v41 = vrot.slane %v1286_v3, 5  ;;  %v1291_v44 = vrot.slane %v1287_v21, 5 }
 0x37c   : > { %1700 = vrcp.f32 %v804_v7  ;;  %v1305_v53 = vsel %vm1304_vm2, %v1301_v35, %v1303_v9  ;;  %v1306_v2 = vsel %vm1304_vm2, %v1303_v9, %v1301_v35 }
 0x37d   : > { %v1311_v32 = vmul.f32 %v1307_v19, %v1305_v53  ;;  %v1312_v39 = vmul.f32 %v1308_v27, %v1306_v2  ;;  %v1295_v9 = vadd.f32 %v1291_v44, %v1270_v48 }
 0x37f   : > { %v1328_v6 = vpop.permute.xlu1 %1327  ;;  %v1315_v47 = vrot.slane %v1311_v32, 5  ;;  %v1316_v1 = vrot.slane %v1312_v39, 5 }
 0x380   : > { %v1330_v7 = vsel %vm1329_vm3, %v1326_v24, %v1328_v6  ;;  %v1331_v37 = vsel %vm1329_vm3, %v1328_v6, %v1326_v24 }
 0x381   : > { %v1336_v42 = vmul.f32 %v1332_v20, %v1330_v7  ;;  %v1337_v59 = vmul.f32 %v1333_v23, %v1331_v37  ;;  %v1320_v29 = vadd.f32 %v1316_v1, %v1295_v9 }
 0x383   : > { %v1340_v5 = vrot.slane %v1336_v42, 5  ;;  %v1341_v51 = vrot.slane %v1337_v59, 5 }
 0x385   : > { %v1345_v11 = vadd.f32 %v1341_v51, %v1320_v29 }
 0x387   : > { %v1626_v10 = vmul.f32 -1.442695, %v1345_v11 }
 0x389   : > { %v1701_v34 = vpop.eup %1700 }
 0x38a   : > { %1360 = vperm.xlu0 %1695, %v1701_v34   ;;  %v1215_v34 = vadd.f32 %v1211_v62, %v2072_v17  ;;  %v1457_v62 = vunpack.c.0.s8 %v1456_v61 }
 0x38c   : > { %v1244_v40 = vadd.f32 %v1240_v54, %v1215_v34  ;;  %v1454_v0 = vpop.permute.xlu1 %1453  ;;  %v1460_v24 = vsub.s32 %v1457_v62, %v1940_v60 }
 0x38e   : > { %v1269_v46 = vadd.f32 %v1265_v15, %v1244_v40  ;;  %v1461_v23 = vrot.slane %v1454_v0, %v1460_v24 }
 0x390   : > { %v1294_v17 = vadd.f32 %v1290_v41, %v1269_v46  ;;  %v1515_v60 = vpop.permute.xlu1 %1514 }
 0x392   : > { %v1319_v63 = vadd.f32 %v1315_v47, %v1294_v17 }
 0x394   : > { %v1344_v35 = vadd.f32 %v1340_v5, %v1319_v63 }
 0x396   : > { %v1625_v58 = vmul.f32 -1.442695, %v1344_v35 }
 0x398   : > { %1702 = vpow2.f32 %v1625_v58 }
 0x399   : > { %1704 = vpow2.f32 %v1626_v10 }
 0x3a5   : > { %v1703_v52 = vpop.eup %1702 }
 0x3a6   : > { %v1705_v16 = vpop.eup %1704  ;;  %v1352_v13 = vadd.f32 1.0, %v1703_v52 }
 0x3a7   : > { %v1353_v25 = vadd.f32 1.0, %v1705_v16 }
 0x3a8   : > { %1706 = vrcp.f32 %v1352_v13 }
 0x3a9   : > { %1708 = vrcp.f32 %v1353_v25 }
 0x3b5   : > { %v1707_v50 = vpop.eup %1706 }
 0x3b6   : > { %v1709_v12 = vpop.eup %1708  ;;  %v1366_v18 = vrot.slane %v1707_v50, %v1365_v45 }
 0x3b7   : > { %v1370_v19 = vrot.slane %v1709_v12, %v1365_v45 }
 0x405   : > { %v1361_v14 = vpop.permute.xlu0 %1360 }
 0x406   : > { %v1371_v49 = vadd.f32 %v1366_v18, %v1361_v14  ;;  %v1372_v6 = vadd.f32 %v1370_v19, %v1361_v14 }
 0x408   : > { %v1375_v4 = vcombine.low %v1371_v49, %v1372_v6  ;;  %v1378_v27 = vrot.slane %v1371_v49, 4  ;;  %v1379_v53 = vrot.slane %v1372_v6, 4 }
 0x40a   : > { %v1382_v54 = vmul.f32 %v1378_v27, %v1870_v22  ;;  %v1377_v3 = vmul.f32 %v1375_v4, %v1862_v8  ;;  %v1383_v2 = vmul.f32 %v1379_v53, %v1872_v26 }
 0x40c   : > { %v1509_v20 = vadd.f32 %v2126_v31, %v1382_v54  ;;  %v1449_v28 = vadd.f32 %v1447_v36, %v1377_v3  ;;  %v1510_v21 = vadd.f32 %v2130_v56, %v1383_v2 }
 0x40e   : > { %v1463_v22 = vadd.f32 %v1461_v23, %v1449_v28  ;;  %v1517_v7 = vadd.f32 %v1515_v60, %v1509_v20  ;;  %v1518_v8 = vadd.f32 %v1515_v60, %v1510_v21 }
 0x410   : > { %1519 = vst [vmem:[%s534_s23] sm:$0xff] %v1463_v22  ;;  %v1522_v26 = vcombine.low %v1517_v7, %v1518_v8 }
 0x412   : > { %1632 = vst [vmem:[%s534_s23 + $0x8] sm:$0xff] %v1522_v26 }
 0x413 PF: > { %s25_s18 = sadd.s32 1, %s1716_s18  }
 0x414   : > { %p22_p4 = scmp.ge.s32.totalorder %s25_s18, 4  }
 0x416   :  { %24 = sbr.rel (!%p22_p4) target bundleno = 1 (0x1), region = 117 }

</bundles_post_ra>
